<compile_context>
chip_gen: v7x
topology: tpu7x:2x2x1
jax: 0.10.0
libtpu: 0.0.40
codegen_flags: <defaults>
</compile_context>

<pallas_src>
import math

import jax
import jax.numpy as jnp
from jax.experimental import pallas as pl
from jax.experimental.pallas import tpu as pltpu

_LANE = 128
_NEG_INF = -1e30


def _round_up(x, m):
    return (x + m - 1) // m * m


def _make_mha_kernel(*, s_valid, scale, with_attn):
    """Builds the kernel. s_valid = true sequence length (<= padded Sp)."""

    def kernel(xf_ref, w_ref, bqkv_ref, wo_ref, bo_ref, *refs):
        if with_attn:
            o_ref, attn_ref, k_sc, v_sc = refs
        else:
            o_ref, k_sc, v_sc = refs
            attn_ref = None

        qt = pl.program_id(1)
        sp = k_sc.shape[0]      # padded sequence length
        tq = o_ref.shape[1]     # query-tile size

        # ---- K / V projections: once per batch element, kept in bf16 scratch.
        @pl.when(qt == 0)
        def _():
            xf = xf_ref[0]                                            # (Sp, Dp) bf16
            k_sc[...] = (jnp.dot(xf, w_ref[1],
                                 preferred_element_type=jnp.float32)
                         + bqkv_ref[1]).astype(k_sc.dtype)            # (Sp, Ep) bf16
            v_sc[...] = (jnp.dot(xf, w_ref[2],
                                 preferred_element_type=jnp.float32)
                         + bqkv_ref[2]).astype(v_sc.dtype)            # (Sp, Ep) bf16

        # ---- Q projection: slice the q-tile rows out of the resident x slab.
        row0 = pl.multiple_of(qt * tq, tq)
        xq = xf_ref[0, pl.ds(row0, tq), :]                            # (TQ, Dp) bf16
        q = (jnp.dot(xq, w_ref[0], preferred_element_type=jnp.float32)
             + bqkv_ref[0])                                           # (TQ, Ep) f32

        # ---- logits = q @ k^T; bf16 operands, f32 accumulation, no transpose.
        logits = jax.lax.dot_general(
            q.astype(jnp.bfloat16), k_sc[...],
            dimension_numbers=(((1,), (1,)), ((), ())),
            preferred_element_type=jnp.float32) * scale               # (TQ, Sp) f32

        if s_valid < sp:  # mask padded key columns (trace-time branch)
            key_ids = jax.lax.broadcasted_iota(jnp.int32, logits.shape, 1)
            logits = jnp.where(key_ids < s_valid, logits, _NEG_INF)

        # ---- softmax in f32; exact reciprocal of the (TQ, 1) denominator so
        #      returned attention rows sum to 1 to f32 accuracy.
        m = jnp.max(logits, axis=-1, keepdims=True)
        p = jnp.exp(logits - m)
        inv = 1.0 / jnp.sum(p, axis=-1, keepdims=True)                # (TQ, 1) f32

        if with_attn:
            attn = p * inv                                            # (TQ, Sp) f32
            values = jnp.dot(attn.astype(jnp.bfloat16), v_sc[...],
                             preferred_element_type=jnp.float32)      # (TQ, Ep) f32
            attn_ref[0] = attn.astype(attn_ref.dtype)
        else:
            # Deferred normalisation: scale the (TQ, Ep) result, not (TQ, Sp).
            values = jnp.dot(p.astype(jnp.bfloat16), v_sc[...],
                             preferred_element_type=jnp.float32) * inv

        # ---- output projection (bf16 operands, f32 accumulation).
        o = (jnp.dot(values.astype(jnp.bfloat16), wo_ref[...],
                     preferred_element_type=jnp.float32)
             + bo_ref[...])                                           # (TQ, Ep) f32
        o_ref[0] = o.astype(o_ref.dtype)

    return kernel


def multihead_attention(x, w_qkv, b_qkv, w_o, b_o, return_attention=True,
                        attn_dtype=jnp.float32):
    """Forward pass matching the PyTorch MultiheadAttention module.

    x: (B, S, D_in); w_qkv: (3E, D_in); b_qkv: (3E,); w_o: (E, E); b_o: (E,).
    Returns (o, attention) or just o if return_attention=False.
    """
    B, S, D_in = x.shape
    E = w_o.shape[0]
    assert w_qkv.shape == (3 * E, D_in)

    Dp = _round_up(D_in, _LANE)
    Ep = _round_up(E, _LANE)
    Sp = _round_up(S, _LANE)

    bf16, f32 = jnp.bfloat16, jnp.float32

    # ---- chip-aware VMEM budget (v7x has 64 MiB/TC, v5e/v6e have 128 MiB).
    try:
        vmem_cap = pltpu.get_tpu_info().vmem_capacity_bytes
    except Exception:                  # e.g. interpret mode / no TPU visible
        vmem_cap = 128 * 2 ** 20

    def vmem_estimate(tq):
        return (2 * Sp * Dp * 2                               # x slab (double-buffered)
                + 3 * Dp * Ep * 2 + 3 * Ep * 4                # W_qkv / b_qkv (single)
                + Ep * Ep * 2 + Ep * 4                        # W_o / b_o (single)
                + 2 * tq * Ep * 4                             # o out tiles
                + (2 * tq * Sp * 4 if return_attention else 0)  # attn out tiles
                + 2 * Sp * Ep * 2                             # bf16 K/V scratch
                + 4 * tq * Sp * 4)                            # softmax intermediates

    TQ = 128
    if Sp % 256 == 0 and vmem_estimate(256) <= int(0.55 * vmem_cap):
        TQ = 256                       # prefer 256 tiles when the budget allows
    n_qt = Sp // TQ

    vmem_limit = int(min(int(0.72 * vmem_cap),
                         max(32 * 2 ** 20, 2 * vmem_estimate(TQ))))

    # ---- pad operands to lane-dense shapes; matmul operands travel in bf16.
    xp = jnp.pad(x.astype(bf16), ((0, 0), (0, Sp - S), (0, Dp - D_in)))

    # W_qkv (3E, D_in) -> stacked (3, Dp, Ep): three clean MXU dots, no slicing.
    w3 = w_qkv.reshape(3, E, D_in).transpose(0, 2, 1).astype(bf16)   # (3, D_in, E)
    w3 = jnp.pad(w3, ((0, 0), (0, Dp - D_in), (0, Ep - E)))
    b3 = jnp.pad(b_qkv.reshape(3, E).astype(f32), ((0, 0), (0, Ep - E)))
    b3 = b3.reshape(3, 1, Ep)

    wo_p = jnp.pad(w_o.T.astype(bf16), ((0, Ep - E), (0, Ep - E)))   # (Ep, Ep)
    bo_p = jnp.pad(b_o.astype(f32), (0, Ep - E)).reshape(1, Ep)

    scale = 1.0 / math.sqrt(E)
    kernel = _make_mha_kernel(s_valid=S, scale=scale,
                              with_attn=return_attention)

    buf1 = pl.Buffered(buffer_count=1)   # constant-index blocks: single buffer
    in_specs = [
        pl.BlockSpec((1, Sp, Dp), lambda b, qt: (b, 0, 0)),           # x slab
        pl.BlockSpec((3, Dp, Ep), lambda b, qt: (0, 0, 0), pipeline_mode=buf1),
        pl.BlockSpec((3, 1, Ep), lambda b, qt: (0, 0, 0), pipeline_mode=buf1),
        pl.BlockSpec((Ep, Ep), lambda b, qt: (0, 0), pipeline_mode=buf1),
        pl.BlockSpec((1, Ep), lambda b, qt: (0, 0), pipeline_mode=buf1),
    ]

    if return_attention:
        out_shape = (jax.ShapeDtypeStruct((B, Sp, Ep), f32),
                     jax.ShapeDtypeStruct((B, Sp, Sp), attn_dtype))
        out_specs = [pl.BlockSpec((1, TQ, Ep), lambda b, qt: (b, qt, 0)),
                     pl.BlockSpec((1, TQ, Sp), lambda b, qt: (b, qt, 0))]
    else:
        out_shape = jax.ShapeDtypeStruct((B, Sp, Ep), f32)
        out_specs = pl.BlockSpec((1, TQ, Ep), lambda b, qt: (b, qt, 0))

    grid_spec = pltpu.PrefetchScalarGridSpec(
        num_scalar_prefetch=0,
        grid=(B, n_qt),
        in_specs=in_specs,
        out_specs=out_specs,
        scratch_shapes=[pltpu.VMEM((Sp, Ep), bf16),     # K scratch
                        pltpu.VMEM((Sp, Ep), bf16)],    # V scratch
    )

    res = pl.pallas_call(
        kernel,
        out_shape=out_shape,
        grid_spec=grid_spec,
        compiler_params=pltpu.CompilerParams(
            # qt carries the K/V scratch across iterations -> "arbitrary".
            dimension_semantics=("parallel", "arbitrary"),
            vmem_limit_bytes=vmem_limit),
    )(xp, w3, b3, wo_p, bo_p)

    if return_attention:
        o_pad, attn_pad = res
        return o_pad[:, :S, :E], attn_pad[:, :S, :S]
    return res[:, :S, :E]


def _xavier_uniform(key, shape):
    # shape = (fan_out, fan_in), matching torch nn.Linear weight layout.
    fan_out, fan_in = shape
    bound = math.sqrt(6.0 / (fan_in + fan_out))
    return jax.random.uniform(key, shape, jnp.float32, -bound, bound)


def _reference(x, w_qkv, b_qkv, w_o, b_o, *, mimic_bf16=False):
    """Pure-JAX reference. With mimic_bf16=True it rounds the same tensors to
    bf16 that the kernel feeds to the MXU, so tolerances can stay tight."""
    E = w_o.shape[0]
    f32 = jnp.float32
    hi = jax.lax.Precision.HIGHEST

    def r(a):
        return a.astype(jnp.bfloat16).astype(f32) if mimic_bf16 else a

    qkv = jnp.einsum("bsd,ed->bse", r(x), r(w_qkv), precision=hi) + b_qkv
    q, k, v = qkv[..., :E], qkv[..., E:2 * E], qkv[..., 2 * E:]
    logits = jnp.einsum("bqe,bke->bqk", r(q), r(k), precision=hi) / math.sqrt(E)
    attn = jax.nn.softmax(logits, axis=-1)
    values = jnp.einsum("bqk,bke->bqe", r(attn), r(v), precision=hi)
    o = jnp.einsum("bse,fe->bsf", r(values), r(w_o), precision=hi) + b_o
    return o, attn


if __name__ == "__main__":
    # Small shapes consistent with the module's forward pass.
    batch, seq, input_dim, embed_dim = 2, 8, 32, 32

    key = jax.random.PRNGKey(0)
    kx, kw1, kw2 = jax.random.split(key, 3)

    x = jax.random.normal(kx, (batch, seq, input_dim), jnp.float32)

    # Deterministic parameter init mirroring _reset_parameters():
    # xavier_uniform weights, zero biases.
    w_qkv = _xavier_uniform(kw1, (3 * embed_dim, input_dim))   # (3E, D_in)
    b_qkv = jnp.zeros((3 * embed_dim,), jnp.float32)
    w_o = _xavier_uniform(kw2, (embed_dim, embed_dim))         # (E, E)
    b_o = jnp.zeros((embed_dim,), jnp.float32)

    o, attn = multihead_attention(x, w_qkv, b_qkv, w_o, b_o)
    jax.block_until_ready((o, attn))

    o_only = multihead_attention(x, w_qkv, b_qkv, w_o, b_o,
                                 return_attention=False)
    jax.block_until_ready(o_only)

    # Reference mimicking the kernel's bf16-operand / f32-accumulate scheme.
    o_ref, attn_ref = _reference(x, w_qkv, b_qkv, w_o, b_o, mimic_bf16=True)

    assert o.shape == (batch, seq, embed_dim)
    assert attn.shape == (batch, seq, seq)
    # Tolerances cover occasional bf16 rounding-boundary flips between kernel
    # (MXU accumulation order) and the reference.
    assert jnp.allclose(o, o_ref, atol=2e-2, rtol=2e-2), \
        float(jnp.max(jnp.abs(o - o_ref)))
    assert jnp.allclose(attn, attn_ref, atol=5e-3, rtol=5e-3), \
        float(jnp.max(jnp.abs(attn - attn_ref)))
    assert jnp.allclose(o_only, o, atol=2e-2, rtol=2e-2), \
        float(jnp.max(jnp.abs(o_only - o)))
    # Exact (non-approx) normalisation -> rows sum to 1 to f32 accuracy.
    assert jnp.allclose(jnp.sum(attn, axis=-1), 1.0, atol=1e-3), \
        float(jnp.max(jnp.abs(jnp.sum(attn, axis=-1) - 1.0)))

    print("KERNEL_OK")
</pallas_src>

<mosaic_0001>
module attributes {stable_mosaic.version = 11 : i64} {
  func.func @kernel(%arg0: i32, %arg1: i32, %arg2: memref<1x128x128xbf16, #tpu.memory_space<vmem>>, %arg3: memref<3x128x128xbf16, #tpu.memory_space<vmem>>, %arg4: memref<3x1x128xf32, #tpu.memory_space<vmem>>, %arg5: memref<128x128xbf16, #tpu.memory_space<vmem>>, %arg6: memref<1x128xf32, #tpu.memory_space<vmem>>, %arg7: memref<1x128x128xf32, #tpu.memory_space<vmem>>, %arg8: memref<1x128x128xf32, #tpu.memory_space<vmem>>, %arg9: memref<128x128xbf16, #tpu.memory_space<vmem>>, %arg10: memref<128x128xbf16, #tpu.memory_space<vmem>>) attributes {dimension_semantics = [#tpu.dimension_semantics<parallel>, #tpu.dimension_semantics<arbitrary>], iteration_bounds = array<i64: 2, 1>, scalar_prefetch = 0 : i64, scratch_operands = 2 : i64, tpu.core_type = #tpu.core_type<tc>, window_params = [{transform_indices = @transform_0, window_bounds = array<i64: 1, 128, 128>}, {pipeline_mode = #tpu.pipeline_mode<synchronous>, transform_indices = @transform_1, window_bounds = array<i64: 3, 128, 128>}, {pipeline_mode = #tpu.pipeline_mode<synchronous>, transform_indices = @transform_2, window_bounds = array<i64: 3, 1, 128>}, {pipeline_mode = #tpu.pipeline_mode<synchronous>, transform_indices = @transform_3, window_bounds = array<i64: 128, 128>}, {pipeline_mode = #tpu.pipeline_mode<synchronous>, transform_indices = @transform_4, window_bounds = array<i64: 1, 128>}, {transform_indices = @transform_5, window_bounds = array<i64: 1, 128, 128>}, {transform_indices = @transform_6, window_bounds = array<i64: 1, 128, 128>}]} {
    %c0_i32 = arith.constant 0 : i32
    %0 = arith.cmpi eq, %arg1, %c0_i32 : i32
    %1 = arith.extui %0 : i1 to i32
    %c0_i32_0 = arith.constant 0 : i32
    %2 = arith.cmpi ne, %1, %c0_i32_0 : i32
    scf.if %2 {
      %c0_30 = arith.constant 0 : index
      %c0_31 = arith.constant 0 : index
      %c0_32 = arith.constant 0 : index
      %51 = vector.load %arg2[%c0_30, %c0_31, %c0_32] : memref<1x128x128xbf16, #tpu.memory_space<vmem>>, vector<1x128x128xbf16>
      %52 = vector.shape_cast %51 : vector<1x128x128xbf16> to vector<128x128xbf16>
      %c1 = arith.constant 1 : index
      %c0_33 = arith.constant 0 : index
      %c0_34 = arith.constant 0 : index
      %53 = vector.load %arg3[%c1, %c0_33, %c0_34] : memref<3x128x128xbf16, #tpu.memory_space<vmem>>, vector<1x128x128xbf16>
      %54 = vector.shape_cast %53 : vector<1x128x128xbf16> to vector<128x128xbf16>
      %cst_35 = arith.constant dense<0.000000e+00> : vector<128x128xf32>
      %55 = tpu.matmul %52, %54, %cst_35 {dimension_numbers = #tpu.dot_dimension_numbers<[1], [0], [0], [1], [0, 0, 1, 1], [], []>} : vector<128x128xbf16>, vector<128x128xbf16>, vector<128x128xf32> -> vector<128x128xf32>
      %c1_36 = arith.constant 1 : index
      %c0_37 = arith.constant 0 : index
      %c0_38 = arith.constant 0 : index
      %56 = vector.load %arg4[%c1_36, %c0_37, %c0_38] : memref<3x1x128xf32, #tpu.memory_space<vmem>>, vector<1x1x128xf32>
      %57 = vector.shape_cast %56 : vector<1x1x128xf32> to vector<1x128xf32>
      %58 = vector.broadcast %57 : vector<1x128xf32> to vector<128x128xf32>
      %59 = arith.addf %55, %58 : vector<128x128xf32>
      %60 = arith.truncf %59 : vector<128x128xf32> to vector<128x128xbf16>
      %c0_39 = arith.constant 0 : index
      %c0_40 = arith.constant 0 : index
      %61 = vector.load %arg9[%c0_39, %c0_40] : memref<128x128xbf16, #tpu.memory_space<vmem>>, vector<128x128xbf16>
      tpu.vector_store %arg9[%c0_39, %c0_40], %60 {strides = array<i32>} : memref<128x128xbf16, #tpu.memory_space<vmem>>, vector<128x128xbf16>,
      %c2 = arith.constant 2 : index
      %c0_41 = arith.constant 0 : index
      %c0_42 = arith.constant 0 : index
      %62 = vector.load %arg3[%c2, %c0_41, %c0_42] : memref<3x128x128xbf16, #tpu.memory_space<vmem>>, vector<1x128x128xbf16>
      %63 = vector.shape_cast %62 : vector<1x128x128xbf16> to vector<128x128xbf16>
      %cst_43 = arith.constant dense<0.000000e+00> : vector<128x128xf32>
      %64 = tpu.matmul %52, %63, %cst_43 {dimension_numbers = #tpu.dot_dimension_numbers<[1], [0], [0], [1], [0, 0, 1, 1], [], []>} : vector<128x128xbf16>, vector<128x128xbf16>, vector<128x128xf32> -> vector<128x128xf32>
      %c2_44 = arith.constant 2 : index
      %c0_45 = arith.constant 0 : index
      %c0_46 = arith.constant 0 : index
      %65 = vector.load %arg4[%c2_44, %c0_45, %c0_46] : memref<3x1x128xf32, #tpu.memory_space<vmem>>, vector<1x1x128xf32>
      %66 = vector.shape_cast %65 : vector<1x1x128xf32> to vector<1x128xf32>
      %67 = vector.broadcast %66 : vector<1x128xf32> to vector<128x128xf32>
      %68 = arith.addf %64, %67 : vector<128x128xf32>
      %69 = arith.truncf %68 : vector<128x128xf32> to vector<128x128xbf16>
      %c0_47 = arith.constant 0 : index
      %c0_48 = arith.constant 0 : index
      %70 = vector.load %arg10[%c0_47, %c0_48] : memref<128x128xbf16, #tpu.memory_space<vmem>>, vector<128x128xbf16>
      tpu.vector_store %arg10[%c0_47, %c0_48], %69 {strides = array<i32>} : memref<128x128xbf16, #tpu.memory_space<vmem>>, vector<128x128xbf16>,
    } else {
    }
    %c128_i32 = arith.constant 128 : i32
    %3 = arith.muli %arg1, %c128_i32 : i32
    %4 = tpu.assume_multiple %3, 128 : i32
    %c0 = arith.constant 0 : index
    %5 = arith.index_cast %4 : i32 to index
    %c0_1 = arith.constant 0 : index
    %6 = vector.load %arg2[%c0, %5, %c0_1] : memref<1x128x128xbf16, #tpu.memory_space<vmem>>, vector<1x128x128xbf16>
    %7 = vector.shape_cast %6 : vector<1x128x128xbf16> to vector<128x128xbf16>
    %c0_2 = arith.constant 0 : index
    %c0_3 = arith.constant 0 : index
    %c0_4 = arith.constant 0 : index
    %8 = vector.load %arg3[%c0_2, %c0_3, %c0_4] : memref<3x128x128xbf16, #tpu.memory_space<vmem>>, vector<1x128x128xbf16>
    %9 = vector.shape_cast %8 : vector<1x128x128xbf16> to vector<128x128xbf16>
    %cst = arith.constant dense<0.000000e+00> : vector<128x128xf32>
    %10 = tpu.matmul %7, %9, %cst {dimension_numbers = #tpu.dot_dimension_numbers<[1], [0], [0], [1], [0, 0, 1, 1], [], []>} : vector<128x128xbf16>, vector<128x128xbf16>, vector<128x128xf32> -> vector<128x128xf32>
    %c0_5 = arith.constant 0 : index
    %c0_6 = arith.constant 0 : index
    %c0_7 = arith.constant 0 : index
    %11 = vector.load %arg4[%c0_5, %c0_6, %c0_7] : memref<3x1x128xf32, #tpu.memory_space<vmem>>, vector<1x1x128xf32>
    %12 = vector.shape_cast %11 : vector<1x1x128xf32> to vector<1x128xf32>
    %13 = vector.broadcast %12 : vector<1x128xf32> to vector<128x128xf32>
    %14 = arith.addf %10, %13 : vector<128x128xf32>
    %15 = arith.truncf %14 : vector<128x128xf32> to vector<128x128xbf16>
    %c0_8 = arith.constant 0 : index
    %c0_9 = arith.constant 0 : index
    %16 = vector.load %arg9[%c0_8, %c0_9] : memref<128x128xbf16, #tpu.memory_space<vmem>>, vector<128x128xbf16>
    %cst_10 = arith.constant dense<0.000000e+00> : vector<128x128xf32>
    %17 = tpu.matmul %15, %16, %cst_10 {dimension_numbers = #tpu.dot_dimension_numbers<[1], [1], [0], [0], [0, 0, 1, 0], [], []>} : vector<128x128xbf16>, vector<128x128xbf16>, vector<128x128xf32> -> vector<128x128xf32>
    %cst_11 = arith.constant 0.176776692 : f32
    %18 = vector.broadcast %cst_11 : f32 to vector<128x128xf32>
    %19 = arith.mulf %17, %18 : vector<128x128xf32>
    %20 = tpu.iota {dimensions = array<i32: 1>} : vector<128x128xi32>
    %c8_i32 = arith.constant 8 : i32
    %21 = vector.broadcast %c8_i32 : i32 to vector<128x128xi32>
    %22 = arith.cmpi slt, %20, %21 : vector<128x128xi32>
    %cst_12 = arith.constant -1.000000e+30 : f32
    %23 = vector.broadcast %cst_12 : f32 to vector<128x128xf32>
    %24 = arith.select %22, %19, %23 : vector<128x128xi1>, vector<128x128xf32>
    %cst_13 = arith.constant dense<0xFF800000> : vector<128xf32>
    %25 = vector.multi_reduction <maximumf>, %24, %cst_13 [1] : vector<128x128xf32> to vector<128xf32>
    %26 = vector.shape_cast %25 : vector<128xf32> to vector<128x1xf32>
    %27 = vector.broadcast %26 : vector<128x1xf32> to vector<128x128xf32>
    %28 = arith.subf %24, %27 : vector<128x128xf32>
    %29 = math.exp %28 : vector<128x128xf32>
    %cst_14 = arith.constant dense<0.000000e+00> : vector<128xf32>
    %30 = vector.multi_reduction <add>, %29, %cst_14 [1] : vector<128x128xf32> to vector<128xf32>
    %31 = vector.shape_cast %30 : vector<128xf32> to vector<128x1xf32>
    %cst_15 = arith.constant 1.000000e+00 : f32
    %32 = vector.broadcast %cst_15 : f32 to vector<128x1xf32>
    %33 = arith.divf %32, %31 : vector<128x1xf32>
    %34 = vector.broadcast %33 : vector<128x1xf32> to vector<128x128xf32>
    %35 = arith.mulf %29, %34 : vector<128x128xf32>
    %36 = arith.truncf %35 : vector<128x128xf32> to vector<128x128xbf16>
    %c0_16 = arith.constant 0 : index
    %c0_17 = arith.constant 0 : index
    %37 = vector.load %arg10[%c0_16, %c0_17] : memref<128x128xbf16, #tpu.memory_space<vmem>>, vector<128x128xbf16>
    %cst_18 = arith.constant dense<0.000000e+00> : vector<128x128xf32>
    %38 = tpu.matmul %36, %37, %cst_18 {dimension_numbers = #tpu.dot_dimension_numbers<[1], [0], [0], [1], [0, 0, 1, 1], [], []>} : vector<128x128xbf16>, vector<128x128xbf16>, vector<128x128xf32> -> vector<128x128xf32>
    %c0_19 = arith.constant 0 : index
    %c0_20 = arith.constant 0 : index
    %c0_21 = arith.constant 0 : index
    %39 = vector.load %arg8[%c0_19, %c0_20, %c0_21] : memref<1x128x128xf32, #tpu.memory_space<vmem>>, vector<1x128x128xf32>
    %40 = vector.shape_cast %39 : vector<1x128x128xf32> to vector<128x128xf32>
    %41 = vector.shape_cast %35 : vector<128x128xf32> to vector<1x128x128xf32>
    tpu.vector_store %arg8[%c0_19, %c0_20, %c0_21], %41 {strides = array<i32>} : memref<1x128x128xf32, #tpu.memory_space<vmem>>, vector<1x128x128xf32>,
    %42 = arith.truncf %38 : vector<128x128xf32> to vector<128x128xbf16>
    %c0_22 = arith.constant 0 : index
    %c0_23 = arith.constant 0 : index
    %43 = vector.load %arg5[%c0_22, %c0_23] : memref<128x128xbf16, #tpu.memory_space<vmem>>, vector<128x128xbf16>
    %cst_24 = arith.constant dense<0.000000e+00> : vector<128x128xf32>
    %44 = tpu.matmul %42, %43, %cst_24 {dimension_numbers = #tpu.dot_dimension_numbers<[1], [0], [0], [1], [0, 0, 1, 1], [], []>} : vector<128x128xbf16>, vector<128x128xbf16>, vector<128x128xf32> -> vector<128x128xf32>
    %c0_25 = arith.constant 0 : index
    %c0_26 = arith.constant 0 : index
    %45 = vector.load %arg6[%c0_25, %c0_26] : memref<1x128xf32, #tpu.memory_space<vmem>>, vector<1x128xf32>
    %46 = vector.broadcast %45 : vector<1x128xf32> to vector<128x128xf32>
    %47 = arith.addf %44, %46 : vector<128x128xf32>
    %c0_27 = arith.constant 0 : index
    %c0_28 = arith.constant 0 : index
    %c0_29 = arith.constant 0 : index
    %48 = vector.load %arg7[%c0_27, %c0_28, %c0_29] : memref<1x128x128xf32, #tpu.memory_space<vmem>>, vector<1x128x128xf32>
    %49 = vector.shape_cast %48 : vector<1x128x128xf32> to vector<128x128xf32>
    %50 = vector.shape_cast %47 : vector<128x128xf32> to vector<1x128x128xf32>
    tpu.vector_store %arg7[%c0_27, %c0_28, %c0_29], %50 {strides = array<i32>} : memref<1x128x128xf32, #tpu.memory_space<vmem>>, vector<1x128x128xf32>,
    return
  }
  func.func @transform_0(%arg0: i32, %arg1: i32) -> (i32, i32, i32) {
    %c0_i32 = arith.constant 0 : i32
    %c0_i32_0 = arith.constant 0 : i32
    %c0_i32_1 = arith.constant 0 : i32
    return %arg0, %c0_i32, %c0_i32_0 : i32, i32, i32
  }
  func.func @transform_1(%arg0: i32, %arg1: i32) -> (i32, i32, i32) {
    %c0_i32 = arith.constant 0 : i32
    %c0_i32_0 = arith.constant 0 : i32
    %c0_i32_1 = arith.constant 0 : i32
    %c0_i32_2 = arith.constant 0 : i32
    return %c0_i32, %c0_i32_0, %c0_i32_1 : i32, i32, i32
  }
  func.func @transform_2(%arg0: i32, %arg1: i32) -> (i32, i32, i32) {
    %c0_i32 = arith.constant 0 : i32
    %c0_i32_0 = arith.constant 0 : i32
    %c0_i32_1 = arith.constant 0 : i32
    %c0_i32_2 = arith.constant 0 : i32
    return %c0_i32, %c0_i32_0, %c0_i32_1 : i32, i32, i32
  }
  func.func @transform_3(%arg0: i32, %arg1: i32) -> (i32, i32) {
    %c0_i32 = arith.constant 0 : i32
    %c0_i32_0 = arith.constant 0 : i32
    %c0_i32_1 = arith.constant 0 : i32
    return %c0_i32, %c0_i32_0 : i32, i32
  }
  func.func @transform_4(%arg0: i32, %arg1: i32) -> (i32, i32) {
    %c0_i32 = arith.constant 0 : i32
    %c0_i32_0 = arith.constant 0 : i32
    %c0_i32_1 = arith.constant 0 : i32
    return %c0_i32, %c0_i32_0 : i32, i32
  }
  func.func @transform_5(%arg0: i32, %arg1: i32) -> (i32, i32, i32) {
    %c0_i32 = arith.constant 0 : i32
    %c0_i32_0 = arith.constant 0 : i32
    return %arg0, %arg1, %c0_i32 : i32, i32, i32
  }
  func.func @transform_6(%arg0: i32, %arg1: i32) -> (i32, i32, i32) {
    %c0_i32 = arith.constant 0 : i32
    %c0_i32_0 = arith.constant 0 : i32
    return %arg0, %arg1, %c0_i32 : i32, i32, i32
  }
}

</mosaic_0001>

<bundles_post_ra>
// kernel: tpu_custom_call.1
= control target key start
LH: loop header
LB: loop body
LE: loop exit
PB: predicated region body
PF: predicated region fallthrough
CT: control target
= control target key end

     0   :  { %12 = vsyncpa [#allocation5], 0  ;;  %s3295_s0 = inlined_call_operand.hbm [shape: bf16[2,128,128], index: 0, kind: input, shape index: {}]   ;;  %s3296_s1 = inlined_call_operand.hbm [shape: bf16[3,128,128], index: 1, kind: input, shape index: {}]   ;;  %s3297_s2 = inlined_call_operand.vmem [shape: f32[3,1,128], index: 2, kind: input, shape index: {}]   ;;  %s3298_s3 = inlined_call_operand.hbm [shape: bf16[128,128], index: 3, kind: input, shape index: {}]   ;;  %s3299_s4 = inlined_call_operand.vmem [shape: f32[1,128], index: 4, kind: input, shape index: {}]   ;;  %s3300_s5 = inlined_call_operand.hbm [shape: f32[2,128,128], index: 5, kind: output, shape index: {0}]   ;;  %s3301_s6 = inlined_call_operand.hbm [shape: f32[2,128,128], index: 6, kind: output, shape index: {1}]  }
   0x1   :  { %14 = vsyncpa [#allocation5 + $0x1], 0 }
   0x2   :  { %15 = vsyncpa [#allocation8], 0 }
   0x3   :  { %16 = vsyncpa [#allocation6], 0 }
   0x4   :  { %18 = vsyncpa [#allocation6 + $0x1], 0 }
   0x5   :  { %19 = vsyncpa [#allocation12], 0 }
   0x6   :  { %21 = vsyncpa [#allocation12 + $0x1], 0  ;;  %s2652_s21 = smov 0   ;;  %s2654_s22 = smov 0  }
   0x7   :  { %s2656_s23 = smov 0   ;;  %s2658_s24 = smov 0  }
   0x8   :  { %s2660_s25 = smov 0   ;;  %s2662_s26 = smov 0  }
   0x9 LB: > { %s1814_s27 = sadd.s32 4294967295, %s2606_s26   ;;  %s1815_s28 = sadd.s32 4294967294, %s2606_s26   ;;  %s2606_s26 = sphi %s2662_s26, %s27_s26   ;;  %s2602_s25 = sphi %s2660_s25, %s3328_s25   ;;  %s2598_s24 = sphi %s2658_s24, %s3327_s24   ;;  %s2594_s23 = sphi %s2656_s23, %s3326_s23   ;;  %s2590_s22 = sphi %s2654_s22, %s3325_s22   ;;  %s2586_s21 = sphi %s2652_s21, %s3324_s21  }
   0xa   : > { %p59_p0 = scmp.ne.s32.totalorder %s2590_s22, %s2586_s21  ;;  %p2686_p1 = scmp.eq.s32.totalorder %s1814_s27, 0 }
   0xb   : > { %p2690_p2 = scmp.eq.s32.totalorder %s1814_s27, 1  ;;  %p175_p3 = scmp.eq.s32.totalorder %s1815_s28, 1 }
   0xc   : > { %s3308_s29 = scalar_select %p2686_p1, 1, 0 }
   0xd   : > { %p2696_p4 = por %p2686_p1, %p59_p0  ;;  %p1816_p5 = scmp.ge.s32.totalorder %s2606_s26, 1 }
   0xe   : > { %p2701_p6 = por %p175_p3, %p59_p0  ;;  %p210_p7 = scmp.lt.s32.totalorder %s2606_s26, 3 }
   0xf   : > { %s3310_s7 = scalar_select %p2696_p4, 1, 0 }
  0x10   : > { %s3311_s8 = scalar_select %p2701_p6, 1, 0 }
  0x11   : > { %p2706_p8 = pnand %p1816_p5, %p210_p7  ;;  %s2608_s10 = smov [#allocation7]  }
  0x12   : > { %3312 = sst [smem:[#allocation17_spill]] %s3311_s8  ;;  %s222_s11 = sshll.u32 %s2608_s10, 4  ;;  %s2710_s11 = int_to_ptr.vmem [resolvable:$true] %s222_s11 }
  0x13   : > { %p2212_p9 = pneg %p2706_p8  ;;  %s2609_s13 = smov [#allocation9]  }
  0x14   : > { %s238_s14 = sshll.u32 %s2609_s13, 4  ;;  %s2402_s17 = scalar_lea.hbm %s3296_s1, 3072  ;;  %s2721_s14 = int_to_ptr.vmem [resolvable:$true] %s238_s14 }
  0x15   : > { %p2717_p11 = pnand %p2212_p9, %p2686_p1  ;;  %p2403_p12 = scmp.ne.s32.totalorder %s3296_s1, %s2402_s17 }
  0x16   : > { %p2409_p5 = scmp.lt.u32.totalorder %s2402_s17, %s3296_s1 }
  0x17   : > { %p2404_p13 = pneg %p2717_p11 }
  0x19   : > { %p2405_p0 = pnand %p2404_p13, %p2403_p12 }
  0x1b   : > { %p2406_p3 = pneg %p2405_p0 }
  0x1d   : > { %p2411_p7 = pnand %p2409_p5, %p2406_p3 }
  0x1f   : > { %2414 = shalt.err (!%p2411_p7)
}
  0x20   : > { %s2415_s28 = scalar_lea.vmem %s2710_s11, 3072  ;;  %p2423_p1 = scmp.lt.s32.totalorder %s2710_s11, %s2710_s11 }
  0x21   : > { %p2416_p9 = scmp.ne.s32.totalorder %s2710_s11, %s2415_s28  ;;  %p2424_p12 = scmp.lt.s32.totalorder %s2415_s28, %s2415_s28 }
  0x23   : > { %p2418_p10 = pnand %p2416_p9, %p2404_p13  ;;  %p2425_p0 = por %p2424_p12, %p2423_p1 }
  0x25   : > { %p2419_p6 = pneg %p2418_p10 }
  0x27   : > { %p2426_p4 = pnand %p2425_p0, %p2419_p6 }
  0x29   : > { %2429 = shalt.err (!%p2426_p4)
}
  0x2a   : > { %s3306_s10 = smov 64   ;;  %s2611_s13 = smov 4  }
  0x2b   : > { %2215 = dma.hbm_to_vmem [thread:$0]  (!%p2717_p11), %s3296_s1, 3072, %s2710_s11, [#allocation8], %s3306_s10, %s3306_s10, %s2611_s13  }
  0x2c   : > { %s2430_s19 = scalar_lea.hbm %s3298_s3, 1024 }
  0x2d   : > { %p2431_p1 = scmp.ne.s32.totalorder %s3298_s3, %s2430_s19  ;;  %p2437_p10 = scmp.lt.u32.totalorder %s2430_s19, %s3298_s3 }
  0x2f   : > { %p2433_p4 = pnand %p2431_p1, %p2404_p13 }
  0x31   : > { %p2434_p6 = pneg %p2433_p4 }
  0x33   : > { %p2439_p3 = pnand %p2437_p10, %p2434_p6 }
  0x35   : > { %2442 = shalt.err (!%p2439_p3)
}
  0x36   : > { %s2443_s11 = scalar_lea.vmem %s2721_s14, 1024  ;;  %p2451_p12 = scmp.lt.s32.totalorder %s2721_s14, %s2721_s14 }
  0x37   : > { %p2444_p5 = scmp.ne.s32.totalorder %s2721_s14, %s2443_s11  ;;  %p2452_p0 = scmp.lt.s32.totalorder %s2443_s11, %s2443_s11 }
  0x39   : > { %p2446_p7 = pnand %p2444_p5, %p2404_p13  ;;  %p2453_p1 = por %p2452_p0, %p2451_p12 }
  0x3b   : > { %p2447_p9 = pneg %p2446_p7 }
  0x3d   : > { %p2454_p4 = pnand %p2453_p1, %p2447_p9 }
  0x3f   : > { %2457 = shalt.err (!%p2454_p4)
}
  0x40   : > { %2218 = dma.hbm_to_vmem [thread:$0]  (!%p2717_p11), %s3298_s3, 1024, %s2721_s14, [#allocation8], %s3306_s10, %s3306_s10, %s2611_s13  }
  0x41   : > { %s39_s12 = sadd.s32 1, %s2602_s25  ;;  %s46_s16 = sadd.s32 1, %s2594_s23 }
  0x42   : > { %p41_p13 = scmp.ge.s32.totalorder %s39_s12, 2  ;;  %p53_p6 = scmp.ne.s32.totalorder %s2594_s23, %s2590_s22 }
  0x43   : > { %p54_p10 = scmp.eq.s32.totalorder %s2606_s26, 0  ;;  %p2232_p3 = scmp.lt.s32.totalorder %s2606_s26, 2 }
  0x44   : > { %s3330_s12 = smov (%p41_p13, %s39_s12), 0  ;;  %p2791_p7 = por %p2690_p2, %p53_p6 }
  0x45   : > { %p55_p5 = por %p54_p10, %p53_p6  ;;  %s43_s18 = ssub.s32 %s2602_s25, %s3330_s12 }
  0x46   : > { %s3315_s17 = scalar_select %p2791_p7, 1, 0 }
  0x47   : > { %s255_s19 = sand.u32 1, %s2594_s23   ;;  %p44_p9 = scmp.eq.s32.totalorder %s43_s18, 0 }
  0x48   : > { %s1820_s14 = sshll.u32 %s255_s19, 6  ;;  %s1891_s20 = sshll.u32 %s2602_s25, 10 }
  0x49   : > { %s2800_s27 = scalar_select %p44_p9, %s2594_s23, %s46_s16  }
  0x4a   : > { %s2805_s8 = scalar_lea.hbm %s3295_s0, %s1891_s20  ;;  %s259_s30 = scalar_lea.vmem [#allocation4], %s1820_s14 }
  0x4b   : > { %s266_s15 = sshll.u32 %s259_s30, 4  ;;  %p2809_p2 = pnand %p2232_p3, %p55_p5  ;;  %s2813_s15 = int_to_ptr.vmem [resolvable:$true] %s266_s15 }
  0x4c   : > { %s2815_s16 = scalar_lea.sflag [#allocation5], %s255_s19  ;;  %s2458_s18 = scalar_lea.hbm %s2805_s8, 1024 }
  0x4d   : > { %p2459_p11 = scmp.ne.s32.totalorder %s2805_s8, %s2458_s18  ;;  %p2460_p12 = pneg %p2809_p2 }
  0x4e   : > { %s2463_s28 = scalar_lea.hbm %s3295_s0, 2048  ;;  %p2464_p4 = scmp.lt.u32.totalorder %s2805_s8, %s3295_s0 }
  0x4f   : > { %p2461_p0 = pnand %p2460_p12, %p2459_p11  ;;  %p2465_p13 = scmp.lt.u32.totalorder %s2463_s28, %s2458_s18 }
  0x50   : > { %p2467_p10 = scmp.lt.u32.totalorder %s2458_s18, %s2805_s8 }
  0x51   : > { %p2462_p1 = pneg %p2461_p0  ;;  %p2466_p6 = por %p2465_p13, %p2464_p4 }
  0x53   : > { %p2468_p3 = por %p2467_p10, %p2466_p6 }
  0x55   : > { %p2469_p5 = pnand %p2468_p3, %p2462_p1 }
  0x57   : > { %2472 = shalt.err (!%p2469_p5)
}
  0x58   : > { %s2473_s19 = scalar_lea.vmem %s2813_s15, 1024  ;;  %s2612_s14 = smov [#allocation4]  }
  0x59   : > { %p2474_p9 = scmp.ne.s32.totalorder %s2813_s15, %s2473_s19  ;;  %s2478_s20 = sshll.u32 %s2612_s14, 4  ;;  %s2479_s20 = int_to_ptr.vmem [resolvable:$false] %s2478_s20 }
  0x5a   : > { %s2480_s11 = scalar_lea.vmem %s2479_s20, 2048  ;;  %p2481_p7 = scmp.lt.s32.totalorder %s2813_s15, %s2479_s20 }
  0x5b   : > { %p2476_p11 = pnand %p2474_p9, %p2460_p12  ;;  %p2482_p4 = scmp.lt.s32.totalorder %s2480_s11, %s2473_s19 }
  0x5d   : > { %p2477_p0 = pneg %p2476_p11  ;;  %p2483_p13 = por %p2482_p4, %p2481_p7 }
  0x5f   : > { %p2484_p6 = pnand %p2483_p13, %p2477_p0 }
  0x61   : > { %2487 = shalt.err (!%p2484_p6)
}
  0x62   : > { %s3317_s18 = smov 64   ;;  %278 = sbr.rel (%p2706_p8) target bundleno = 1437 (0x59d), region = 40 }
  0x63   : > { %2222 = dma.hbm_to_vmem [thread:$0]  (!%p2809_p2), %s2805_s8, 1024, %s2813_s15, %s2815_s16, %s3317_s18, %s3317_s18, %s2611_s13  }
  0x64   : > { %s2849_s28 = sand.u32 (!%p2706_p8), 1, %s2590_s22   ;;  %p3318_p7 = scmp.ne.s32.totalorder (!%p2706_p8), %s3310_s7, 0 }
  0x65   : > { %s1824_s30 = sshll.u32 (!%p2706_p8), %s2849_s28, 6  ;;  %s281_s19 = scalar_lea.sflag (!%p2706_p8), [#allocation5], %s2849_s28 }
  0x66   : > { %s2853_s14 = scalar_lea.vmem (!%p2706_p8), [#allocation4], %s1824_s30 }
  0x69   : > { %2569 = dma.done.wait (%p3318_p7), %s281_s19, 1024  }
  0x6a   : > { %2571 = vsyncadd (%p3318_p7), %s281_s19, 4294966272  ;;  %p3319_p2 = scmp.ne.s32.totalorder %s3308_s29, 0 }
  0x6c   : > { %2573 = dma.done.wait (%p3319_p2), [#allocation8], 4096  }
  0x6d   : > { %2575 = vsyncadd (%p3319_p2), [#allocation8], 4294963200  ;;  %v2290_v0 = vld [vmem:[#allocation7 + $0x40] sm:$0xff]   ;;  %v2291_v1 = vld [vmem:[#allocation7 + $0x48] sm:$0xff]   ;;  %s1827_s15 = sshll.u32 %s2849_s28, 7  ;;  %s1892_s20 = sshll.u32 %s2598_s24, 11 }
  0x6e   : > { %1990 = vmatprep.subr.bf16.mxu0 %v2290_v0  ;;  %v2292_v2 = vld [vmem:[#allocation7 + $0x50] sm:$0xff]   ;;  %v2293_v3 = vld [vmem:[#allocation7 + $0x58] sm:$0xff]   ;;  %v2298_v4 = vld [vmem:[%s2853_s14] sm:$0xff]   ;;  %s3128_s16 = scalar_lea.vmem [#allocation11], %s1827_s15  ;;  %s3180_s30 = scalar_lea.hbm %s3301_s6, %s1892_s20 }
  0x6f   : > { %1991 = vmatpush3.bf16.msra.mxu0 %v2290_v0  ;;  %2006 = vmatprep.mubr.bf16.mxu0 %v2298_v4  ;;  %v2294_v5 = vld [vmem:[#allocation7 + $0x60] sm:$0xff]   ;;  %v2295_v6 = vld [vmem:[#allocation7 + $0x68] sm:$0xff]   ;;  %v2296_v7 = vld [vmem:[#allocation7 + $0x70] sm:$0xff]   ;;  %s1674_s19 = sshll.u32 %s3128_s16, 4  ;;  %p3320_p12 = scmp.ne.s32.totalorder %s3315_s17, 0  ;;  %s3183_s19 = int_to_ptr.vmem [resolvable:$true] %s1674_s19 }
  0x70   : > { %1992 = vmatprep.subr.bf16.mxu0 %v2291_v1  ;;  %2038 = vmatprep.mubr.bf16.mxu1 %v2298_v4  ;;  %v2297_v8 = vld [vmem:[#allocation7 + $0x78] sm:$0xff]   ;;  %v2303_v9 = vld [vmem:[#allocation7] sm:$0xff]   ;;  %v2865_v10 = vld [vmem:[%s2853_s14 + $0x8] sm:$0xff]   ;;  %s2488_s29 = scalar_lea.vmem %s3183_s19, 2048  ;;  %s2613_s7 = smov [#allocation11]  }
  0x71   : > { %v2868_v11 = vld [vmem:[%s2853_s14 + $0x10] sm:$0xff]   ;;  %v2305_v12 = vld [vmem:[#allocation7 + $0x8] sm:$0xff]   ;;  %v2322_v13 = vld [vmem:[#allocation7 + $0x80] sm:$0xff]   ;;  %p2489_p8 = scmp.ne.s32.totalorder %s3183_s19, %s2488_s29  ;;  %s2492_s9 = sshll.u32 %s2613_s7, 4  ;;  %s2493_s9 = int_to_ptr.vmem [resolvable:$false] %s2492_s9 }
  0x72   : > { %v2323_v14 = vld [vmem:[#allocation7 + $0x88] sm:$0xff]   ;;  %2022 = vmatprep.subr.bf16.mxu1 %v2322_v13  ;;  %v2301_v15 = vld [vmem:[%s2853_s14 + $0x18] sm:$0xff]   ;;  %v2306_v16 = vld [vmem:[#allocation7 + $0x10] sm:$0xff]   ;;  %s2494_s10 = scalar_lea.vmem %s2493_s9, 4096  ;;  %p2495_p3 = scmp.lt.s32.totalorder %s3183_s19, %s2493_s9 }
  0x73   : > { %1993 = vmatpush3.bf16.msra.mxu0 %v2291_v1  ;;  %2023 = vmatpush3.bf16.msra.mxu1 %v2322_v13  ;;  %v2302_v17 = vld [vmem:[%s2853_s14 + $0x20] sm:$0xff]   ;;  %v2324_v18 = vld [vmem:[#allocation7 + $0x90] sm:$0xff]   ;;  %v2307_v19 = vld [vmem:[#allocation7 + $0x18] sm:$0xff]   ;;  %p2490_p1 = pnand %p2489_p8, %p3320_p12  ;;  %p2496_p5 = scmp.lt.s32.totalorder %s2494_s10, %s2488_s29 }
  0x74   : > { %1994 = vmatprep.subr.bf16.mxu0 %v2292_v2  ;;  %2024 = vmatprep.subr.bf16.mxu1 %v2323_v14  ;;  %v2325_v20 = vld [vmem:[#allocation7 + $0x98] sm:$0xff]   ;;  %v2309_v21 = vld [vmem:[#allocation7 + $0x20] sm:$0xff]   ;;  %v2304_v23 = vld [vmem:[%s2853_s14 + $0x28] sm:$0xff]  }
  0x75   : > { %v2326_v22 = vld [vmem:[#allocation7 + $0xa0] sm:$0xff]   ;;  %v2308_v24 = vld [vmem:[%s2853_s14 + $0x30] sm:$0xff]   ;;  %v2311_v25 = vld [vmem:[#allocation7 + $0x28] sm:$0xff]   ;;  %p2491_p10 = pneg %p2490_p1  ;;  %p2497_p9 = por %p2496_p5, %p2495_p3 }
  0x76   : > { %v2327_v26 = vld [vmem:[#allocation7 + $0xa8] sm:$0xff]   ;;  %v2312_v27 = vld [vmem:[#allocation7 + $0x30] sm:$0xff]   ;;  %v2310_v29 = vld [vmem:[%s2853_s14 + $0x38] sm:$0xff]  }
  0x77   : > { %1995 = vmatpush3.bf16.msra.mxu0 %v2292_v2  ;;  %2025 = vmatpush3.bf16.msra.mxu1 %v2323_v14  ;;  %v2328_v28 = vld [vmem:[#allocation7 + $0xb0] sm:$0xff]   ;;  %v2314_v30 = vld [vmem:[%s2853_s14] sm:$0xff]   ;;  %v2313_v31 = vld [vmem:[#allocation7 + $0x38] sm:$0xff]   ;;  %p2498_p11 = pnand %p2497_p9, %p2491_p10 }
  0x78   : > { %1996 = vmatprep.subr.bf16.mxu0 %v2293_v3  ;;  %2026 = vmatprep.subr.bf16.mxu1 %v2324_v18  ;;  %v2329_v32 = vld [vmem:[#allocation7 + $0xb8] sm:$0xff]   ;;  %v2315_v33 = vld [vmem:[%s2853_s14 + $0x8] sm:$0xff]   ;;  %v2316_v34 = vld [vmem:[%s2853_s14 + $0x10] sm:$0xff]  }
  0x79   : > { %v2317_v35 = vld [vmem:[%s2853_s14 + $0x18] sm:$0xff]   ;;  %v2318_v36 = vld [vmem:[%s2853_s14 + $0x20] sm:$0xff]   ;;  %v2319_v37 = vld [vmem:[%s2853_s14 + $0x28] sm:$0xff]  }
  0x7a   : > { %v2320_v38 = vld [vmem:[%s2853_s14 + $0x30] sm:$0xff]   ;;  %v2321_v39 = vld [vmem:[%s2853_s14 + $0x38] sm:$0xff]   ;;  %v1830_v41 = vld [vmem:[%s3297_s2 + $0x1] ss:$0 sm:$0xff]  ;;  %s1641_s14 = scalar_lea.sflag [#allocation12], %s2849_s28 }
  0x7b   : > { %1997 = vmatpush3.bf16.msra.mxu0 %v2293_v3  ;;  %2027 = vmatpush3.bf16.msra.mxu1 %v2324_v18 }
  0x7c   : > { %1998 = vmatprep.subr.bf16.mxu0 %v2294_v5  ;;  %2028 = vmatprep.subr.bf16.mxu1 %v2325_v20 }
  0x7f   : > { %1999 = vmatpush3.bf16.msra.mxu0 %v2294_v5  ;;  %2029 = vmatpush3.bf16.msra.mxu1 %v2325_v20 }
  0x80   : > { %2000 = vmatprep.subr.bf16.mxu0 %v2295_v6  ;;  %2030 = vmatprep.subr.bf16.mxu1 %v2326_v22 }
  0x83   : > { %2001 = vmatpush3.bf16.msra.mxu0 %v2295_v6  ;;  %2031 = vmatpush3.bf16.msra.mxu1 %v2326_v22 }
  0x84   : > { %2002 = vmatprep.subr.bf16.mxu0 %v2296_v7  ;;  %2032 = vmatprep.subr.bf16.mxu1 %v2327_v26 }
  0x87   : > { %2003 = vmatpush3.bf16.msra.mxu0 %v2296_v7  ;;  %2033 = vmatpush3.bf16.msra.mxu1 %v2327_v26 }
  0x88   : > { %2004 = vmatprep.subr.bf16.mxu0 %v2297_v8  ;;  %2034 = vmatprep.subr.bf16.mxu1 %v2328_v28 }
  0x8b   : > { %2005 = vmatpush3.bf16.msra.mxu0 %v2297_v8  ;;  %2035 = vmatpush3.bf16.msra.mxu1 %v2328_v28 }
  0x8c   : > { %2054 = vmatprep.subr.bf16.mxu0 %v2303_v9  ;;  %2036 = vmatprep.subr.bf16.mxu1 %v2329_v32 }
  0x8e   : > { %2007 = vmatmul.mubr.bf16.vlgmr.msra.gmra.mrb[0].mxu0 %v2865_v10 }
  0x8f   : > { %2010 = vmatprep.mubr.bf16.mxu0 %v2868_v11  ;;  %2055 = vmatpush3.bf16.msra.mxu0 %v2303_v9 }
  0x90   : > { %2056 = vmatprep.subr.bf16.mxu0 %v2305_v12  ;;  %2037 = vmatpush3.bf16.msra.mxu1 %v2329_v32 }
  0x93   : > { %2057 = vmatpush3.bf16.msra.mxu0 %v2305_v12  ;;  %2039 = vmatmul.mubr.bf16.vlgmr.msra.gmra.mrb[0].mxu1 %v2865_v10 }
  0x94   : > { %2058 = vmatprep.subr.bf16.mxu0 %v2306_v16  ;;  %2042 = vmatprep.mubr.bf16.mxu1 %v2868_v11 }
  0x96   : > { %2011 = vmatmul.mubr.bf16.gmra.mrb[4].mxu0 %v2301_v15 }
  0x97   : > { %2014 = vmatprep.mubr.bf16.mxu0 %v2302_v17  ;;  %2059 = vmatpush3.bf16.msra.mxu0 %v2306_v16 }
  0x98   : > { %2060 = vmatprep.subr.bf16.mxu0 %v2307_v19 }
  0x9b   : > { %2061 = vmatpush3.bf16.msra.mxu0 %v2307_v19  ;;  %2043 = vmatmul.mubr.bf16.gmra.mrb[4].mxu1 %v2301_v15  ;;  %v2904_v19 = vld [vmem:[%s3297_s2 + $0x2] ss:$0 sm:$0xff] }
  0x9c   : > { %2062 = vmatprep.subr.bf16.mxu0 %v2309_v21  ;;  %2046 = vmatprep.mubr.bf16.mxu1 %v2302_v17  ;;  %v2899_v17 = vld [vmem:[%s3297_s2] ss:$0 sm:$0xff] }
  0x9e   : > { %2015 = vmatmul.mubr.bf16.gmra.mrb[8].mxu0 %v2304_v23 }
  0x9f   : > { %2018 = vmatprep.mubr.bf16.mxu0 %v2308_v24  ;;  %2063 = vmatpush3.bf16.msra.mxu0 %v2309_v21 }
  0xa0   : > { %2064 = vmatprep.subr.bf16.mxu0 %v2311_v25 }
  0xa3   : > { %2065 = vmatpush3.bf16.msra.mxu0 %v2311_v25  ;;  %2047 = vmatmul.mubr.bf16.gmra.mrb[8].mxu1 %v2304_v23 }
  0xa4   : > { %2066 = vmatprep.subr.bf16.mxu0 %v2312_v27  ;;  %2050 = vmatprep.mubr.bf16.mxu1 %v2308_v24 }
  0xa6   : > { %2019 = vmatmul.mubr.bf16.gmra.mrb[12].mxu0 %v2310_v29 }
  0xa7   : > { %2067 = vmatpush3.bf16.msra.mxu0 %v2312_v27  ;;  %2070 = vmatprep.mubr.bf16.mxu0 %v2314_v30 }
  0xa8   : > { %2068 = vmatprep.subr.bf16.mxu0 %v2313_v31 }
  0xab   : > { %2069 = vmatpush3.bf16.msra.mxu0 %v2313_v31  ;;  %2051 = vmatmul.mubr.bf16.gmra.mrb[12].mxu1 %v2310_v29 }
  0xae   : > { %2071 = vmatmul.mubr.bf16.vlgmr.msra.gmra.mrb[16].mxu0 %v2315_v33 }
  0xaf   : > { %2074 = vmatprep.mubr.bf16.mxu0 %v2316_v34 }
  0xb6   : > { %2075 = vmatmul.mubr.bf16.gmra.mrb[20].mxu0 %v2317_v35 }
  0xb7   : > { %2078 = vmatprep.mubr.bf16.mxu0 %v2318_v36 }
  0xbe   : > { %2079 = vmatmul.mubr.bf16.gmra.mrb[24].mxu0 %v2319_v37 }
  0xbf   : > { %2082 = vmatprep.mubr.bf16.mxu0 %v2320_v38 }
  0xc6   : > { %2083 = vmatmul.mubr.bf16.gmra.mrb[28].mxu0 %v2321_v39 }
 0x161   : > { %v2008_v40 = vpop.f32.mrb[0].mxu0 }
 0x162   : > { %v504_v42 = vpop.f32.mrb[1].mxu0  ;;  %v513_v44 = vadd.f32 %v2008_v40, %v1830_v41 }
 0x163   : > { %v2009_v43 = vpop.f32.mrb[2].mxu0  ;;  %v505_v47 = vadd.f32 %v1830_v41, %v504_v42 }
 0x164   : > { %v516_v45 = vadd.f32 %v2009_v43, %v1830_v41  ;;  %v507_v46 = vpop.f32.mrb[3].mxu0 }
 0x165   : > { %v508_v48 = vadd.f32 %v1830_v41, %v507_v46 }
 0x166   : > { %v568_v49 = vpack.c.bf16 %v516_v45, %v513_v44  ;;  %v2040_v22 = vpop.f32.mrb[0].mxu1 }
 0x167   : > { %v567_v50 = vpack.c.bf16 %v508_v48, %v505_v47  ;;  %v699_v25 = vadd.f32 %v2040_v22, %v2904_v19  ;;  %v690_v26 = vpop.f32.mrb[1].mxu1 }
 0x168   : > { %v691_v29 = vadd.f32 %v2904_v19, %v690_v26  ;;  %v2041_v30 = vpop.f32.mrb[2].mxu1 }
 0x169   : > { %2086 = vmatprep.subr.bf16.mxu1 %v567_v50  ;;  %v2012_v51 = vpop.f32.mrb[4].mxu0  ;;  %v702_v32 = vadd.f32 %v2041_v30, %v2904_v19  ;;  %v693_v33 = vpop.f32.mrb[3].mxu1 }
 0x16a   : > { %2087 = vmatpush3.bf16.xpose.msra.mxu1 %v567_v50  ;;  %v529_v52 = vadd.f32 %v2012_v51, %v1830_v41  ;;  %v520_v53 = vpop.f32.mrb[5].mxu0  ;;  %v694_v35 = vadd.f32 %v2904_v19, %v693_v33 }
 0x16b   : > { %2088 = vmatprep.subr.bf16.mxu1 %v568_v49  ;;  %v521_v54 = vadd.f32 %v1830_v41, %v520_v53  ;;  %v2013_v55 = vpop.f32.mrb[6].mxu0  ;;  %v754_v37 = vpack.c.bf16 %v702_v32, %v699_v25 }
 0x16c   : > { %v532_v56 = vadd.f32 %v2013_v55, %v1830_v41  ;;  %v523_v57 = vpop.f32.mrb[7].mxu0  ;;  %v753_v38 = vpack.c.bf16 %v694_v35, %v691_v29 }
 0x16d   : > { %v524_v58 = vadd.f32 %v1830_v41, %v523_v57 }
 0x16e   : > { %v570_v59 = vpack.c.bf16 %v532_v56, %v529_v52  ;;  %2118 = vmatprep.subr.bf16.mxu0 %v753_v38  ;;  %v2044_v42 = vpop.f32.mrb[4].mxu1 }
 0x16f   : > { %v569_v60 = vpack.c.bf16 %v524_v58, %v521_v54  ;;  %2119 = vmatpush3.bf16.msra.mxu0 %v753_v38  ;;  %v715_v45 = vadd.f32 %v2044_v42, %v2904_v19  ;;  %v706_v46 = vpop.f32.mrb[5].mxu1 }
 0x170   : > { %2120 = vmatprep.subr.bf16.mxu0 %v754_v37  ;;  %v2045_v50 = vpop.f32.mrb[6].mxu1 }
 0x171   : > { %v2016_v61 = vpop.f32.mrb[8].mxu0  ;;  %v718_v52 = vadd.f32 %v2045_v50, %v2904_v19  ;;  %v709_v53 = vpop.f32.mrb[7].mxu1 }
 0x172   : > { %2089 = vmatpush3.bf16.xpose.msra.mxu1 %v568_v49  ;;  %v545_v62 = vadd.f32 %v2016_v61, %v1830_v41  ;;  %v536_v63 = vpop.f32.mrb[9].mxu0  ;;  %v707_v49 = vadd.f32 %v2904_v19, %v706_v46  ;;  %v710_v55 = vadd.f32 %v2904_v19, %v709_v53 }
 0x173   : > { %2090 = vmatprep.subr.bf16.mxu1 %v569_v60  ;;  %v537_v0 = vadd.f32 %v1830_v41, %v536_v63  ;;  %v2017_v1 = vpop.f32.mrb[10].mxu0  ;;  %2121 = vmatpush3.bf16.msra.mxu0 %v754_v37  ;;  %v756_v57 = vpack.c.bf16 %v718_v52, %v715_v45 }
 0x174   : > { %v548_v2 = vadd.f32 %v2017_v1, %v1830_v41  ;;  %v539_v3 = vpop.f32.mrb[11].mxu0  ;;  %v755_v58 = vpack.c.bf16 %v710_v55, %v707_v49 }
 0x175   : > { %v540_v4 = vadd.f32 %v1830_v41, %v539_v3 }
 0x176   : > { %v2890_v5 = vpack.c.bf16 %v548_v2, %v545_v62  ;;  %v2048_v62 = vpop.f32.mrb[8].mxu1  ;;  %2122 = vmatprep.subr.bf16.mxu0 %v755_v58 }
 0x177   : > { %v571_v6 = vpack.c.bf16 %v540_v4, %v537_v0  ;;  %v731_v1 = vadd.f32 %v2048_v62, %v2904_v19  ;;  %v722_v2 = vpop.f32.mrb[9].mxu1  ;;  %2123 = vmatpush3.bf16.msra.mxu0 %v755_v58 }
 0x178   : > { %2124 = vmatprep.subr.bf16.mxu0 %v756_v57 }
 0x179   : > { %v2020_v7 = vpop.f32.mrb[12].mxu0 }
 0x17a   : > { %2091 = vmatpush3.bf16.xpose.msra.mxu1 %v569_v60  ;;  %v561_v8 = vadd.f32 %v2020_v7, %v1830_v41  ;;  %v552_v9 = vpop.f32.mrb[13].mxu0 }
 0x17b   : > { %2092 = vmatprep.subr.bf16.mxu1 %v570_v59  ;;  %v553_v10 = vadd.f32 %v1830_v41, %v552_v9  ;;  %v2021_v11 = vpop.f32.mrb[14].mxu0  ;;  %2125 = vmatpush3.bf16.msra.mxu0 %v756_v57 }
 0x17c   : > { %v564_v12 = vadd.f32 %v2021_v11, %v1830_v41  ;;  %v555_v13 = vpop.f32.mrb[15].mxu0 }
 0x17d   : > { %v556_v14 = vadd.f32 %v1830_v41, %v555_v13 }
 0x17e   : > { %v2892_v15 = vpack.c.bf16 %v564_v12, %v561_v8 }
 0x17f   : > { %v2894_v16 = vpack.c.bf16 %v556_v14, %v553_v10 }
 0x181   : > { %v2072_v18 = vpop.f32.mrb[16].mxu0 }
 0x182   : > { %2093 = vmatpush3.bf16.xpose.msra.mxu1 %v570_v59  ;;  %v2907_v20 = vadd.f32 %v2072_v18, %v2899_v17  ;;  %v943_v21 = vpop.f32.mrb[17].mxu0 }
 0x183   : > { %2094 = vmatprep.subr.bf16.mxu1 %v571_v6  ;;  %v944_v23 = vadd.f32 %v2899_v17, %v943_v21  ;;  %v2073_v24 = vpop.f32.mrb[18].mxu0 }
 0x184   : > { %v2912_v27 = vadd.f32 %v2073_v24, %v2899_v17  ;;  %v946_v28 = vpop.f32.mrb[19].mxu0 }
 0x185   : > { %v947_v31 = vadd.f32 %v2899_v17, %v946_v28 }
 0x186   : > { %v1007_v34 = vpack.c.bf16 %v2912_v27, %v2907_v20 }
 0x187   : > { %v1006_v36 = vpack.c.bf16 %v947_v31, %v944_v23 }
 0x189   : > { %2102 = vmatprep.mubr.bf16.mxu1 %v1006_v36  ;;  %v2076_v39 = vpop.f32.mrb[20].mxu0 }
 0x18a   : > { %2095 = vmatpush3.bf16.xpose.msra.mxu1 %v571_v6  ;;  %v2921_v40 = vadd.f32 %v2076_v39, %v2899_v17  ;;  %v959_v41 = vpop.f32.mrb[21].mxu0  ;;  %v723_v6 = vadd.f32 %v2904_v19, %v722_v2 }
 0x18b   : > { %2096 = vmatprep.subr.bf16.mxu1 %v2890_v5  ;;  %v2925_v43 = vadd.f32 %v2899_v17, %v959_v41  ;;  %v2077_v44 = vpop.f32.mrb[22].mxu0 }
 0x18c   : > { %v2929_v47 = vadd.f32 %v2077_v44, %v2899_v17  ;;  %v962_v48 = vpop.f32.mrb[23].mxu0 }
 0x18d   : > { %v2933_v51 = vadd.f32 %v2899_v17, %v962_v48 }
 0x18e   : > { %v1009_v54 = vpack.c.bf16 %v2929_v47, %v2921_v40 }
 0x18f   : > { %v1008_v56 = vpack.c.bf16 %v2933_v51, %v2925_v43 }
 0x191   : > { %v2080_v59 = vpop.f32.mrb[24].mxu0 }
 0x192   : > { %2097 = vmatpush3.bf16.xpose.msra.mxu1 %v2890_v5  ;;  %v984_v60 = vadd.f32 %v2080_v59, %v2899_v17  ;;  %v975_v61 = vpop.f32.mrb[25].mxu0  ;;  %v2049_v5 = vpop.f32.mrb[10].mxu1 }
 0x193   : > { %2098 = vmatprep.subr.bf16.mxu1 %v2894_v16  ;;  %v976_v63 = vadd.f32 %v2899_v17, %v975_v61  ;;  %v2081_v0 = vpop.f32.mrb[26].mxu0  ;;  %v734_v8 = vadd.f32 %v2049_v5, %v2904_v19  ;;  %v725_v9 = vpop.f32.mrb[11].mxu1 }
 0x194   : > { %v987_v3 = vadd.f32 %v2081_v0, %v2899_v17  ;;  %v978_v4 = vpop.f32.mrb[27].mxu0  ;;  %v726_v11 = vadd.f32 %v2904_v19, %v725_v9  ;;  %v2052_v23 = vpop.f32.mrb[12].mxu1 }
 0x195   : > { %v979_v7 = vadd.f32 %v2899_v17, %v978_v4  ;;  %v758_v13 = vpack.c.bf16 %v734_v8, %v731_v1  ;;  %v747_v26 = vadd.f32 %v2052_v23, %v2904_v19  ;;  %v738_v28 = vpop.f32.mrb[13].mxu1 }
 0x196   : > { %v1011_v10 = vpack.c.bf16 %v987_v3, %v984_v60  ;;  %v757_v14 = vpack.c.bf16 %v726_v11, %v723_v6  ;;  %v739_v31 = vadd.f32 %v2904_v19, %v738_v28 }
 0x197   : > { %v1010_v12 = vpack.c.bf16 %v979_v7, %v976_v63 }
 0x198   : > { %2126 = vmatprep.subr.bf16.mxu0 %v757_v14 }
 0x199   : > { %v2084_v18 = vpop.f32.mrb[28].mxu0  ;;  %2127 = vmatpush3.bf16.msra.mxu0 %v757_v14 }
 0x19a   : > { %2099 = vmatpush3.bf16.xpose.msra.mxu1 %v2894_v16  ;;  %v1000_v21 = vadd.f32 %v2084_v18, %v2899_v17  ;;  %v991_v22 = vpop.f32.mrb[29].mxu0  ;;  %v2053_v16 = vpop.f32.mrb[14].mxu1  ;;  %2128 = vmatprep.subr.bf16.mxu0 %v758_v13 }
 0x19b   : > { %2100 = vmatprep.subr.bf16.mxu1 %v2892_v15  ;;  %v992_v24 = vadd.f32 %v2899_v17, %v991_v22  ;;  %v2085_v25 = vpop.f32.mrb[30].mxu0  ;;  %v750_v33 = vadd.f32 %v2053_v16, %v2904_v19  ;;  %v741_v35 = vpop.f32.mrb[15].mxu1 }
 0x19c   : > { %v1003_v29 = vadd.f32 %v2085_v25, %v2899_v17  ;;  %v994_v30 = vpop.f32.mrb[31].mxu0  ;;  %v742_v37 = vadd.f32 %v2904_v19, %v741_v35 }
 0x19d   : > { %v995_v32 = vadd.f32 %v2899_v17, %v994_v30  ;;  %v760_v39 = vpack.c.bf16 %v750_v33, %v747_v26  ;;  %2129 = vmatpush3.bf16.msra.mxu0 %v758_v13  ;;  %v1135_v17 = vlaneseq }
 0x19e   : > { %v1013_v36 = vpack.c.bf16 %v1003_v29, %v1000_v21  ;;  %v759_v41 = vpack.c.bf16 %v742_v37, %v739_v31 }
 0x19f   : > { %v1012_v38 = vpack.c.bf16 %v995_v32, %v992_v24  ;;  %v2968_v19 = vand.u32 127, %v1135_v17 }
 0x1a0   : > { %2130 = vmatprep.subr.bf16.mxu0 %v759_v41 }
 0x1a1   : > { %2131 = vmatpush3.bf16.msra.mxu0 %v759_v41  ;;  %vm1137_vm0 = vcmp.lt.s32.totalorder %v2968_v19, 8 }
 0x1a2   : > { %2101 = vmatpush3.bf16.xpose.msra.mxu1 %v2892_v15  ;;  %2132 = vmatprep.subr.bf16.mxu0 %v760_v39 }
 0x1a5   : > { %2133 = vmatpush3.bf16.msra.mxu0 %v760_v39 }
 0x1a9   : > { %2103 = vmatmul.mubr.bf16.vlgmr.msra.gmra.mrb[16].mxu1 %v1007_v34 }
 0x1aa   : > { %2106 = vmatprep.mubr.bf16.mxu1 %v1008_v56 }
 0x1b1   : > { %2107 = vmatmul.mubr.bf16.gmra.mrb[20].mxu1 %v1009_v54 }
 0x1b2   : > { %2110 = vmatprep.mubr.bf16.mxu1 %v1010_v12 }
 0x1b9   : > { %2111 = vmatmul.mubr.bf16.gmra.mrb[24].mxu1 %v1011_v10 }
 0x1ba   : > { %2114 = vmatprep.mubr.bf16.mxu1 %v1012_v38 }
 0x1c1   : > { %2115 = vmatmul.mubr.bf16.gmra.mrb[28].mxu1 %v1013_v36 }
 0x27c   : > { %v2104_v15 = vpop.f32.mrb[16].mxu1 }
 0x27d   : > { %v1121_v42 = vmul.f32 0.17677669, %v2104_v15  ;;  %v1056_v43 = vpop.f32.mrb[17].mxu1 }
 0x27e   : > { %v1119_v44 = vmul.f32 0.17677669, %v1056_v43  ;;  %v2105_v20 = vpop.f32.mrb[18].mxu1 }
 0x27f   : > { %v1122_v27 = vmul.f32 0.17677669, %v2105_v20  ;;  %v1059_v34 = vpop.f32.mrb[19].mxu1  ;;  %v2973_v40 = vsel %vm1137_vm0, %v1121_v42, -1e+30 }
 0x280   : > { %v1120_v45 = vmul.f32 0.17677669, %v1059_v34  ;;  %1158 = vmax.xlane.f32.xlu1 %v2973_v40  ;;  %v1138_v46 = vsel %vm1137_vm0, %v1119_v44, -1e+30 }
 0x281   : > { %1154 = vmax.xlane.f32.xlu0 %v1138_v46  ;;  %v2980_v47 = vsel %vm1137_vm0, %v1122_v27, -1e+30 }
 0x282   : > { %v1139_v49 = vsel %vm1137_vm0, %v1120_v45, -1e+30 }
 0x284   : > { %1160 = vmax.xlane.f32.xlu1 %v2980_v47  ;;  %v2108_v48 = vpop.f32.mrb[20].mxu1 }
 0x285   : > { %1156 = vmax.xlane.f32.xlu0 %v1139_v49  ;;  %v1072_v50 = vpop.f32.mrb[21].mxu1  ;;  %v1125_v54 = vmul.f32 0.17677669, %v2108_v48 }
 0x286   : > { %v1123_v51 = vmul.f32 0.17677669, %v1072_v50  ;;  %v2109_v52 = vpop.f32.mrb[22].mxu1 }
 0x287   : > { %v1075_v53 = vpop.f32.mrb[23].mxu1  ;;  %v1126_v57 = vmul.f32 0.17677669, %v2109_v52  ;;  %v1144_v60 = vsel %vm1137_vm0, %v1125_v54, -1e+30 }
 0x288   : > { %v1124_v55 = vmul.f32 0.17677669, %v1075_v53  ;;  %v1142_v56 = vsel %vm1137_vm0, %v1123_v51, -1e+30 }
 0x289   : > { %1162 = vmax.xlane.f32.xlu0 %v1142_v56  ;;  %v2993_v0 = vsel %vm1137_vm0, %v1126_v57, -1e+30 }
 0x28a   : > { %v1143_v58 = vsel %vm1137_vm0, %v1124_v55, -1e+30 }
 0x28b   : > { %1164 = vmax.xlane.f32.xlu1 %v1143_v58 }
 0x28c   : > { %v2112_v59 = vpop.f32.mrb[24].mxu1 }
 0x28d   : > { %1166 = vmax.xlane.f32.xlu0 %v1144_v60  ;;  %v1088_v61 = vpop.f32.mrb[25].mxu1  ;;  %v1129_v2 = vmul.f32 0.17677669, %v2112_v59 }
 0x28e   : > { %v1127_v62 = vmul.f32 0.17677669, %v1088_v61  ;;  %v2113_v63 = vpop.f32.mrb[26].mxu1 }
 0x28f   : > { %1168 = vmax.xlane.f32.xlu1 %v2993_v0  ;;  %v1091_v1 = vpop.f32.mrb[27].mxu1  ;;  %v1130_v6 = vmul.f32 0.17677669, %v2113_v63  ;;  %v3008_v8 = vsel %vm1137_vm0, %v1129_v2, -1e+30 }
 0x290   : > { %v1128_v3 = vmul.f32 0.17677669, %v1091_v1  ;;  %v2998_v4 = vsel %vm1137_vm0, %v1127_v62, -1e+30 }
 0x291   : > { %1170 = vmax.xlane.f32.xlu0 %v2998_v4  ;;  %v3013_v12 = vsel %vm1137_vm0, %v1130_v6, -1e+30 }
 0x292   : > { %v3003_v5 = vsel %vm1137_vm0, %v1128_v3, -1e+30 }
 0x293   : > { %1172 = vmax.xlane.f32.xlu1 %v3003_v5 }
 0x294   : > { %v2116_v7 = vpop.f32.mrb[28].mxu1 }
 0x295   : > { %1174 = vmax.xlane.f32.xlu0 %v3008_v8  ;;  %v1104_v9 = vpop.f32.mrb[29].mxu1  ;;  %v1133_v14 = vmul.f32 0.17677669, %v2116_v7 }
 0x296   : > { %v1131_v10 = vmul.f32 0.17677669, %v1104_v9  ;;  %v2117_v11 = vpop.f32.mrb[30].mxu1 }
 0x297   : > { %1176 = vmax.xlane.f32.xlu1 %v3013_v12  ;;  %v1107_v13 = vpop.f32.mrb[31].mxu1  ;;  %v1134_v22 = vmul.f32 0.17677669, %v2117_v11  ;;  %v3028_v24 = vsel %vm1137_vm0, %v1133_v14, -1e+30 }
 0x298   : > { %v1132_v18 = vmul.f32 0.17677669, %v1107_v13  ;;  %v3018_v21 = vsel %vm1137_vm0, %v1131_v10, -1e+30 }
 0x299   : > { %1178 = vmax.xlane.f32.xlu0 %v3018_v21  ;;  %v3033_v25 = vsel %vm1137_vm0, %v1134_v22, -1e+30 }
 0x29a   : > { %v3023_v23 = vsel %vm1137_vm0, %v1132_v18, -1e+30 }
 0x29b   : > { %1180 = vmax.xlane.f32.xlu1 %v3023_v23 }
 0x29d   : > { %1182 = vmax.xlane.f32.xlu0 %v3028_v24 }
 0x29f   : > { %1184 = vmax.xlane.f32.xlu1 %v3033_v25 }
 0x30d   : > { %v1159_v26 = vpop.xlane.xlu1 %1158 }
 0x30e   : > { %v1188_v28 = vsub.f32 %v2973_v40, %v1159_v26  ;;  %v1155_v29 = vpop.xlane.xlu0 %1154  ;;  %v3095_v26 = vld [vmem:[#allocation9] sm:$0xff]  }
 0x30f   : > { %v1186_v30 = vsub.f32 %v1138_v46, %v1155_v29  ;;  %2150 = vmatprep.subr.bf16.mxu0 %v3095_v26  ;;  %2182 = vmatprep.subr.bf16.mxu1 %v3095_v26  ;;  %v3103_v29 = vld [vmem:[#allocation9 + $0x10] sm:$0xff]  }
 0x310   : > { %v1206_v32 = vmul.f32 1.442695, %v1188_v28  ;;  %v3098_v28 = vld [vmem:[#allocation9 + $0x8] sm:$0xff]   ;;  %2190 = vmatpush3.bf16.msra.mxu1 %v3095_v26 }
 0x311   : > { %v1202_v31 = vmul.f32 1.442695, %v1186_v30  ;;  %v1161_v16 = vpop.xlane.xlu1 %1160  ;;  %2183 = vmatprep.subr.bf16.mxu1 %v3098_v28  ;;  %v3107_v30 = vld [vmem:[#allocation9 + $0x18] sm:$0xff]  }
 0x312   : > { %v1189_v33 = vsub.f32 %v2980_v47, %v1161_v16  ;;  %v1157_v35 = vpop.xlane.xlu0 %1156  ;;  %v3115_v16 = vld [vmem:[#allocation9 + $0x28] sm:$0xff]  }
 0x313   : > { %2338 = vpow2.f32 %v1202_v31  ;;  %v1187_v36 = vsub.f32 %v1139_v49, %v1157_v35  ;;  %v3111_v31 = vld [vmem:[#allocation9 + $0x20] sm:$0xff]  }
 0x314   : > { %2340 = vpow2.f32 %v1206_v32  ;;  %v1208_v38 = vmul.f32 1.442695, %v1189_v33  ;;  %2191 = vmatpush3.bf16.msra.mxu1 %v3098_v28  ;;  %v3119_v32 = vld [vmem:[#allocation9 + $0x30] sm:$0xff]  }
 0x315   : > { %v1204_v37 = vmul.f32 1.442695, %v1187_v36  ;;  %2184 = vmatprep.subr.bf16.mxu1 %v3103_v29 }
 0x316   : > { %v1163_v39 = vpop.xlane.xlu0 %1162 }
 0x317   : > { %2342 = vpow2.f32 %v1204_v37  ;;  %v1190_v41 = vsub.f32 %v1142_v56, %v1163_v39 }
 0x318   : > { %v1165_v17 = vpop.xlane.xlu1 %1164  ;;  %2344 = vpow2.f32 %v1208_v38  ;;  %2192 = vmatpush3.bf16.msra.mxu1 %v3103_v29 }
 0x319   : > { %v1210_v19 = vmul.f32 1.442695, %v1190_v41  ;;  %v1191_v15 = vsub.f32 %v1143_v58, %v1165_v17  ;;  %2185 = vmatprep.subr.bf16.mxu1 %v3107_v30 }
 0x31a   : > { %v1167_v42 = vpop.xlane.xlu0 %1166 }
 0x31b   : > { %2346 = vpow2.f32 %v1210_v19  ;;  %v1212_v43 = vmul.f32 1.442695, %v1191_v15  ;;  %v1192_v44 = vsub.f32 %v1144_v60, %v1167_v42 }
 0x31c   : > { %v1169_v20 = vpop.xlane.xlu1 %1168  ;;  %2193 = vmatpush3.bf16.msra.mxu1 %v3107_v30 }
 0x31d   : > { %v3038_v27 = vpop.eup %2338  ;;  %v1214_v34 = vmul.f32 1.442695, %v1192_v44  ;;  %v1193_v40 = vsub.f32 %v2993_v0, %v1169_v20  ;;  %2348 = vpow2.f32 %v1212_v43  ;;  %2186 = vmatprep.subr.bf16.mxu1 %v3111_v31 }
 0x31e   : > { %v1171_v45 = vpop.xlane.xlu0 %1170  ;;  %1234 = vadd.xlane.f32.xlu0 %v3038_v27  ;;  %v3043_v48 = vpop.eup %2340 }
 0x31f   : > { %2350 = vpow2.f32 %v1214_v34  ;;  %v1216_v46 = vmul.f32 1.442695, %v1193_v40  ;;  %v1194_v47 = vsub.f32 %v2998_v4, %v1171_v45 }
 0x320   : > { %v1173_v49 = vpop.xlane.xlu1 %1172  ;;  %2194 = vmatpush3.bf16.msra.mxu1 %v3111_v31 }
 0x321   : > { %v3045_v50 = vpop.eup %2342  ;;  %v1218_v51 = vmul.f32 1.442695, %v1194_v47  ;;  %v1195_v52 = vsub.f32 %v3003_v5, %v1173_v49  ;;  %2352 = vpow2.f32 %v1216_v46  ;;  %2187 = vmatprep.subr.bf16.mxu1 %v3115_v16 }
 0x322   : > { %v1175_v53 = vpop.xlane.xlu0 %1174  ;;  %1238 = vadd.xlane.f32.xlu0 %v3043_v48  ;;  %1236 = vadd.xlane.f32.xlu1 %v3045_v50  ;;  %v3051_v56 = vpop.eup %2344 }
 0x323   : > { %2354 = vpow2.f32 %v1218_v51  ;;  %v1220_v54 = vmul.f32 1.442695, %v1195_v52  ;;  %v1196_v55 = vsub.f32 %v3008_v8, %v1175_v53 }
 0x324   : > { %v1177_v57 = vpop.xlane.xlu1 %1176  ;;  %2195 = vmatpush3.bf16.msra.mxu1 %v3115_v16 }
 0x325   : > { %v3053_v58 = vpop.eup %2346  ;;  %v1222_v59 = vmul.f32 1.442695, %v1196_v55  ;;  %v1197_v60 = vsub.f32 %v3013_v12, %v1177_v57  ;;  %2356 = vpow2.f32 %v1220_v54  ;;  %2188 = vmatprep.subr.bf16.mxu1 %v3119_v32 }
 0x326   : > { %1242 = vadd.xlane.f32.xlu0 %v3053_v58  ;;  %v1179_v61 = vpop.xlane.xlu0 %1178  ;;  %1240 = vadd.xlane.f32.xlu1 %v3051_v56 }
 0x327   : > { %2358 = vpow2.f32 %v1222_v59  ;;  %v1224_v62 = vmul.f32 1.442695, %v1197_v60  ;;  %v1198_v63 = vsub.f32 %v3018_v21, %v1179_v61  ;;  %v3059_v0 = vpop.eup %2348 }
 0x328   : > { %v1181_v1 = vpop.xlane.xlu1 %1180  ;;  %2196 = vmatpush3.bf16.msra.mxu1 %v3119_v32 }
 0x329   : > { %v3061_v2 = vpop.eup %2350  ;;  %v1226_v3 = vmul.f32 1.442695, %v1198_v63  ;;  %v1199_v4 = vsub.f32 %v3023_v23, %v1181_v1  ;;  %2360 = vpow2.f32 %v1224_v62 }
 0x32a   : > { %1246 = vadd.xlane.f32.xlu0 %v3061_v2  ;;  %v1183_v6 = vpop.xlane.xlu0 %1182  ;;  %1244 = vadd.xlane.f32.xlu1 %v3059_v0 }
 0x32b   : > { %2362 = vpow2.f32 %v1226_v3  ;;  %v1228_v5 = vmul.f32 1.442695, %v1199_v4  ;;  %v1200_v7 = vsub.f32 %v3028_v24, %v1183_v6  ;;  %v3067_v8 = vpop.eup %2352 }
 0x32c   : > { %v1185_v9 = vpop.xlane.xlu1 %1184 }
 0x32d   : > { %v3069_v10 = vpop.eup %2354  ;;  %v1230_v11 = vmul.f32 1.442695, %v1200_v7  ;;  %v1201_v12 = vsub.f32 %v3033_v25, %v1185_v9  ;;  %2364 = vpow2.f32 %v1228_v5 }
 0x32e   : > { %1250 = vadd.xlane.f32.xlu0 %v3069_v10  ;;  %1248 = vadd.xlane.f32.xlu1 %v3067_v8 }
 0x32f   : > { %2366 = vpow2.f32 %v1230_v11  ;;  %v1232_v13 = vmul.f32 1.442695, %v1201_v12  ;;  %v3074_v14 = vpop.eup %2356 }
 0x331   : > { %v3076_v18 = vpop.eup %2358  ;;  %2368 = vpow2.f32 %v1232_v13 }
 0x332   : > { %1254 = vadd.xlane.f32.xlu0 %v3076_v18  ;;  %1252 = vadd.xlane.f32.xlu1 %v3074_v14 }
 0x333   : > { %v3080_v21 = vpop.eup %2360 }
 0x335   : > { %v3082_v22 = vpop.eup %2362 }
 0x336   : > { %1258 = vadd.xlane.f32.xlu0 %v3082_v22  ;;  %1256 = vadd.xlane.f32.xlu1 %v3080_v21 }
 0x337   : > { %v3086_v23 = vpop.eup %2364 }
 0x339   : > { %v3088_v24 = vpop.eup %2366 }
 0x33a   : > { %1262 = vadd.xlane.f32.xlu0 %v3088_v24  ;;  %1260 = vadd.xlane.f32.xlu1 %v3086_v23 }
 0x33b   : > { %v3092_v25 = vpop.eup %2368 }
 0x33e   : > { %1264 = vadd.xlane.f32.xlu1 %v3092_v25 }
 0x3ab   : > { %v1235_v33 = vpop.xlane.xlu0 %1234 }
 0x3ac   : > { %2370 = vrcp.f32 %v1235_v33 }
 0x3af   : > { %v1239_v35 = vpop.xlane.xlu0 %1238  ;;  %v1237_v36 = vpop.xlane.xlu1 %1236 }
 0x3b0   : > { %2372 = vrcp.f32 %v1239_v35 }
 0x3b1   : > { %2374 = vrcp.f32 %v1237_v36 }
 0x3b3   : > { %v1243_v37 = vpop.xlane.xlu0 %1242  ;;  %v1241_v38 = vpop.xlane.xlu1 %1240 }
 0x3b4   : > { %2376 = vrcp.f32 %v1243_v37 }
 0x3b5   : > { %2378 = vrcp.f32 %v1241_v38 }
 0x3b6   : > { %v2371_v39 = vpop.eup %2370 }
 0x3b7   : > { %v1247_v41 = vpop.xlane.xlu0 %1246  ;;  %v1245_v17 = vpop.xlane.xlu1 %1244  ;;  %v1298_v19 = vmul.f32 %v2371_v39, %v3038_v27 }
 0x3b8   : > { %2380 = vrcp.f32 %v1247_v41 }
 0x3b9   : > { %2382 = vrcp.f32 %v1245_v17  ;;  %1427 = vst [vmem:[%s3128_s16] sm:$0xff] %v1298_v19 }
 0x3ba   : > { %v2373_v15 = vpop.eup %2372 }
 0x3bb   : > { %v2375_v42 = vpop.eup %2374  ;;  %v1300_v43 = vmul.f32 %v2373_v15, %v3043_v48  ;;  %v1251_v44 = vpop.xlane.xlu0 %1250 }
 0x3bc   : > { %v1249_v20 = vpop.xlane.xlu1 %1248  ;;  %2384 = vrcp.f32 %v1251_v44  ;;  %v1299_v34 = vmul.f32 %v2375_v42, %v3045_v50 }
 0x3bd   : > { %1429 = vst [vmem:[%s3128_s16 + $0x10] sm:$0xff] %v1300_v43  ;;  %2386 = vrcp.f32 %v1249_v20 }
 0x3be   : > { %v2377_v27 = vpop.eup %2376  ;;  %v1314_v40 = vpack.c.bf16 %v1299_v34, %v1298_v19  ;;  %1428 = vst [vmem:[%s3128_s16 + $0x8] sm:$0xff] %v1299_v34 }
 0x3bf   : > { %v2379_v45 = vpop.eup %2378  ;;  %v1255_v46 = vpop.xlane.xlu0 %1254  ;;  %v1302_v49 = vmul.f32 %v2377_v27, %v3053_v58 }
 0x3c0   : > { %v1253_v47 = vpop.xlane.xlu1 %1252  ;;  %v1301_v51 = vmul.f32 %v2379_v45, %v3051_v56  ;;  %2388 = vrcp.f32 %v1255_v46  ;;  %2134 = vmatprep.mubr.bf16.mxu0 %v1314_v40 }
 0x3c1   : > { %2390 = vrcp.f32 %v1253_v47  ;;  %1431 = vst [vmem:[%s3128_s16 + $0x20] sm:$0xff] %v1302_v49 }
 0x3c2   : > { %v2381_v48 = vpop.eup %2380  ;;  %1430 = vst [vmem:[%s3128_s16 + $0x18] sm:$0xff] %v1301_v51  ;;  %v1315_v50 = vpack.c.bf16 %v1301_v51, %v1300_v43 }
 0x3c3   : > { %v2383_v52 = vpop.eup %2382  ;;  %v1259_v53 = vpop.xlane.xlu0 %1258  ;;  %v1304_v55 = vmul.f32 %v2381_v48, %v3061_v2 }
 0x3c4   : > { %v1257_v54 = vpop.xlane.xlu1 %1256  ;;  %2392 = vrcp.f32 %v1259_v53  ;;  %2135 = vmatmul.mubr.bf16.vlgmr.msra.gmra.mrb[32].mxu0 %v1315_v50  ;;  %v1303_v57 = vmul.f32 %v2383_v52, %v3059_v0 }
 0x3c5   : > { %2394 = vrcp.f32 %v1257_v54  ;;  %1433 = vst [vmem:[%s3128_s16 + $0x30] sm:$0xff] %v1304_v55  ;;  %2151 = vmatpush3.bf16.msra.mxu0 %v3095_v26 }
 0x3c6   : > { %v2385_v56 = vpop.eup %2384  ;;  %v1316_v58 = vpack.c.bf16 %v1303_v57, %v1302_v49  ;;  %1432 = vst [vmem:[%s3128_s16 + $0x28] sm:$0xff] %v1303_v57  ;;  %2152 = vmatprep.subr.bf16.mxu0 %v3098_v28 }
 0x3c7   : > { %v2387_v59 = vpop.eup %2386  ;;  %v1263_v60 = vpop.xlane.xlu0 %1262  ;;  %v1306_v62 = vmul.f32 %v2385_v56, %v3069_v10 }
 0x3c8   : > { %v1261_v61 = vpop.xlane.xlu1 %1260  ;;  %2396 = vrcp.f32 %v1263_v60  ;;  %2138 = vmatprep.mubr.bf16.mxu0 %v1316_v58  ;;  %v1305_v63 = vmul.f32 %v2387_v59, %v3067_v8 }
 0x3c9   : > { %2398 = vrcp.f32 %v1261_v61  ;;  %1435 = vst [vmem:[%s3128_s16 + $0x40] sm:$0xff] %v1306_v62  ;;  %2153 = vmatpush3.bf16.msra.mxu0 %v3098_v28 }
 0x3ca   : > { %v2389_v0 = vpop.eup %2388  ;;  %v1317_v1 = vpack.c.bf16 %v1305_v63, %v1304_v55  ;;  %1434 = vst [vmem:[%s3128_s16 + $0x38] sm:$0xff] %v1305_v63  ;;  %2154 = vmatprep.subr.bf16.mxu0 %v3103_v29 }
 0x3cb   : > { %v2391_v2 = vpop.eup %2390  ;;  %v1308_v4 = vmul.f32 %v2389_v0, %v3076_v18 }
 0x3cc   : > { %v1265_v3 = vpop.xlane.xlu1 %1264  ;;  %2139 = vmatmul.mubr.bf16.gmra.mrb[36].mxu0 %v1317_v1  ;;  %v1307_v6 = vmul.f32 %v2391_v2, %v3074_v14 }
 0x3cd   : > { %2400 = vrcp.f32 %v1265_v3  ;;  %1437 = vst [vmem:[%s3128_s16 + $0x50] sm:$0xff] %v1308_v4  ;;  %2155 = vmatpush3.bf16.msra.mxu0 %v3103_v29 }
 0x3ce   : > { %v2393_v5 = vpop.eup %2392  ;;  %v1318_v7 = vpack.c.bf16 %v1307_v6, %v1306_v62  ;;  %1436 = vst [vmem:[%s3128_s16 + $0x48] sm:$0xff] %v1307_v6  ;;  %2156 = vmatprep.subr.bf16.mxu0 %v3107_v30 }
 0x3cf   : > { %v2395_v8 = vpop.eup %2394  ;;  %v1310_v9 = vmul.f32 %v2393_v5, %v3082_v22 }
 0x3d0   : > { %2142 = vmatprep.mubr.bf16.mxu0 %v1318_v7  ;;  %v1309_v10 = vmul.f32 %v2395_v8, %v3080_v21 }
 0x3d1   : > { %1439 = vst [vmem:[%s3128_s16 + $0x60] sm:$0xff] %v1310_v9  ;;  %2157 = vmatpush3.bf16.msra.mxu0 %v3107_v30 }
 0x3d2   : > { %v2397_v11 = vpop.eup %2396  ;;  %v1319_v12 = vpack.c.bf16 %v1309_v10, %v1308_v4  ;;  %1438 = vst [vmem:[%s3128_s16 + $0x58] sm:$0xff] %v1309_v10  ;;  %2158 = vmatprep.subr.bf16.mxu0 %v3111_v31 }
 0x3d3   : > { %v2399_v13 = vpop.eup %2398  ;;  %v1312_v14 = vmul.f32 %v2397_v11, %v3088_v24 }
 0x3d4   : > { %2143 = vmatmul.mubr.bf16.gmra.mrb[40].mxu0 %v1319_v12  ;;  %v1311_v18 = vmul.f32 %v2399_v13, %v3086_v23  ;;  %v2337_v23 = vld [vmem:[#allocation9 + $0x38] sm:$0xff]  }
 0x3d5   : > { %1441 = vst [vmem:[%s3128_s16 + $0x70] sm:$0xff] %v1312_v14  ;;  %2159 = vmatpush3.bf16.msra.mxu0 %v3111_v31  ;;  %2189 = vmatprep.subr.bf16.mxu1 %v2337_v23 }
 0x3d6   : > { %v1320_v21 = vpack.c.bf16 %v1311_v18, %v1310_v9  ;;  %1440 = vst [vmem:[%s3128_s16 + $0x68] sm:$0xff] %v1311_v18  ;;  %2160 = vmatprep.subr.bf16.mxu0 %v3115_v16  ;;  %2197 = vmatpush3.bf16.msra.mxu1 %v2337_v23 }
 0x3d7   : > { %v2401_v22 = vpop.eup %2400 }
 0x3d8   : > { %v1313_v26 = vmul.f32 %v2401_v22, %v3092_v25  ;;  %2146 = vmatprep.mubr.bf16.mxu0 %v1320_v21 }
 0x3d9   : > { %2161 = vmatpush3.bf16.msra.mxu0 %v3115_v16 }
 0x3da   : > { %v1321_v28 = vpack.c.bf16 %v1313_v26, %v1312_v14  ;;  %1442 = vst [vmem:[%s3128_s16 + $0x78] sm:$0xff] %v1313_v26  ;;  %2162 = vmatprep.subr.bf16.mxu0 %v3119_v32 }
 0x3dc   : > { %2147 = vmatmul.mubr.bf16.gmra.mrb[44].mxu0 %v1321_v28 }
 0x3dd   : > { %2163 = vmatpush3.bf16.msra.mxu0 %v3119_v32 }
 0x3de   : > { %2164 = vmatprep.subr.bf16.mxu0 %v2337_v23 }
 0x3e1   : > { %2165 = vmatpush3.bf16.msra.mxu0 %v2337_v23 }
 0x497   : > { %v2136_v24 = vpop.f32.mrb[32].mxu0 }
 0x498   : > { %v1364_v29 = vpop.f32.mrb[33].mxu0 }
 0x499   : > { %v2137_v30 = vpop.f32.mrb[34].mxu0 }
 0x49a   : > { %v1444_v31 = vpack.c.bf16 %v2137_v30, %v2136_v24  ;;  %v1367_v25 = vpop.f32.mrb[35].mxu0 }
 0x49b   : > { %v1443_v33 = vpack.c.bf16 %v1367_v25, %v1364_v29 }
 0x49d   : > { %2166 = vmatprep.mubr.bf16.mxu0 %v1443_v33 }
 0x49e   : > { %2167 = vmatmul.mubr.bf16.vlgmr.msra.gmra.mrb[48].mxu0 %v1444_v31 }
 0x49f   : > { %v2140_v35 = vpop.f32.mrb[36].mxu0 }
 0x4a0   : > { %v1380_v16 = vpop.f32.mrb[37].mxu0 }
 0x4a1   : > { %v2141_v36 = vpop.f32.mrb[38].mxu0 }
 0x4a2   : > { %v1446_v37 = vpack.c.bf16 %v2141_v36, %v2140_v35  ;;  %v1383_v38 = vpop.f32.mrb[39].mxu0 }
 0x4a3   : > { %v1445_v39 = vpack.c.bf16 %v1383_v38, %v1380_v16 }
 0x4a5   : > { %2170 = vmatprep.mubr.bf16.mxu0 %v1445_v39 }
 0x4a6   : > { %2171 = vmatmul.mubr.bf16.gmra.mrb[52].mxu0 %v1446_v37 }
 0x4a7   : > { %v2144_v32 = vpop.f32.mrb[40].mxu0 }
 0x4a8   : > { %v1396_v41 = vpop.f32.mrb[41].mxu0 }
 0x4a9   : > { %v2145_v17 = vpop.f32.mrb[42].mxu0 }
 0x4aa   : > { %v1448_v19 = vpack.c.bf16 %v2145_v17, %v2144_v32  ;;  %v1399_v15 = vpop.f32.mrb[43].mxu0 }
 0x4ab   : > { %v1447_v42 = vpack.c.bf16 %v1399_v15, %v1396_v41 }
 0x4ad   : > { %2174 = vmatprep.mubr.bf16.mxu1 %v1447_v42 }
 0x4ae   : > { %2175 = vmatmul.mubr.bf16.vlgmr.msra.gmra.mrb[32].mxu1 %v1448_v19 }
 0x4af   : > { %v2148_v43 = vpop.f32.mrb[44].mxu0 }
 0x4b0   : > { %v1412_v44 = vpop.f32.mrb[45].mxu0 }
 0x4b1   : > { %v2149_v20 = vpop.f32.mrb[46].mxu0 }
 0x4b2   : > { %v1450_v34 = vpack.c.bf16 %v2149_v20, %v2148_v43  ;;  %v1415_v27 = vpop.f32.mrb[47].mxu0 }
 0x4b3   : > { %v1449_v40 = vpack.c.bf16 %v1415_v27, %v1412_v44 }
 0x4b5   : > { %2178 = vmatprep.mubr.bf16.mxu1 %v1449_v40 }
 0x4b6   : > { %2179 = vmatmul.mubr.bf16.gmra.mrb[36].mxu1 %v1450_v34 }
 0x4b7   : > { %2501 = shalt.err (!%p2498_p11)
}
 0x4b8   : > { %s2502_s13 = scalar_lea.hbm %s3180_s30, 2048  ;;  %s2506_s11 = scalar_lea.hbm %s3301_s6, 4096 }
 0x4b9   : > { %p2503_p0 = scmp.ne.s32.totalorder %s3180_s30, %s2502_s13  ;;  %p2507_p6 = scmp.lt.u32.totalorder %s3180_s30, %s3301_s6 }
 0x4ba   : > { %p2508_p7 = scmp.lt.u32.totalorder %s2506_s11, %s2502_s13  ;;  %p2510_p8 = scmp.lt.u32.totalorder %s2502_s13, %s3180_s30 }
 0x4bb   : > { %p2504_p4 = pnand %p2503_p0, %p3320_p12 }
 0x4bc   : > { %p2509_p2 = por %p2508_p7, %p2507_p6 }
 0x4bd   : > { %p2505_p13 = pneg %p2504_p4 }
 0x4be   : > { %p2511_p1 = por %p2510_p8, %p2509_p2 }
 0x4c0   : > { %p2512_p10 = pnand %p2511_p1, %p2505_p13 }
 0x4c2   : > { %2515 = shalt.err (!%p2512_p10)
}
 0x4c3   : > { %s2614_s29 = smov 128   ;;  %s2615_s9 = smov 8   ;;  %v1874_v45 = vld [vmem:[%s3299_s4] ss:$0 sm:$0xff] }
 0x4c4   : > { %2209 = dma.vmem_to_hbm [thread:$0]  (%p3320_p12), %s3183_s19, 2048, %s3180_s30, %s1641_s14, %s2614_s29, %s2614_s29, %s2615_s9  }
 0x4c5   : > { %s3217_s13 = scalar_lea.vmem [#allocation10], %s1827_s15  ;;  %s3239_s14 = scalar_lea.hbm %s3300_s5, %s1892_s20 }
 0x4c6   : > { %s1656_s15 = sshll.u32 %s3217_s13, 4  ;;  %s1636_s16 = scalar_lea.sflag [#allocation6], %s2849_s28  ;;  %s3241_s15 = int_to_ptr.vmem [resolvable:$true] %s1656_s15 }
 0x4c7   : > { %s2516_s11 = scalar_lea.vmem %s3241_s15, 2048  ;;  %s2616_s18 = smov [#allocation10]  }
 0x4c8   : > { %p2517_p3 = scmp.ne.s32.totalorder %s3241_s15, %s2516_s11  ;;  %s2520_s24 = sshll.u32 %s2616_s18, 4  ;;  %s2521_s24 = int_to_ptr.vmem [resolvable:$false] %s2520_s24 }
 0x4c9   : > { %s2522_s7 = scalar_lea.vmem %s2521_s24, 4096  ;;  %p2523_p11 = scmp.lt.s32.totalorder %s3241_s15, %s2521_s24 }
 0x4ca   : > { %p2518_p5 = pnand %p2517_p3, %p3320_p12  ;;  %p2524_p0 = scmp.lt.s32.totalorder %s2522_s7, %s2516_s11 }
 0x4cc   : > { %p2519_p9 = pneg %p2518_p5  ;;  %p2525_p4 = por %p2524_p0, %p2523_p11 }
 0x4ce   : > { %p2526_p13 = pnand %p2525_p4, %p2519_p9 }
 0x571   : > { %v2168_v46 = vpop.f32.mrb[48].mxu0 }
 0x572   : > { %v1565_v47 = vadd.f32 %v2168_v46, %v1874_v45  ;;  %v1556_v49 = vpop.f32.mrb[49].mxu0 }
 0x573   : > { %v1557_v51 = vadd.f32 %v1874_v45, %v1556_v49  ;;  %v2169_v48 = vpop.f32.mrb[50].mxu0 }
 0x574   : > { %1621 = vst [vmem:[%s3217_s13 + $0x10] sm:$0xff] %v1565_v47  ;;  %v1568_v50 = vadd.f32 %v2169_v48, %v1874_v45  ;;  %v1559_v52 = vpop.f32.mrb[51].mxu0 }
 0x575   : > { %1619 = vst [vmem:[%s3217_s13] sm:$0xff] %v1557_v51  ;;  %v1560_v53 = vadd.f32 %v1874_v45, %v1559_v52 }
 0x576   : > { %1622 = vst [vmem:[%s3217_s13 + $0x18] sm:$0xff] %v1568_v50 }
 0x577   : > { %1620 = vst [vmem:[%s3217_s13 + $0x8] sm:$0xff] %v1560_v53 }
 0x579   : > { %v2172_v54 = vpop.f32.mrb[52].mxu0 }
 0x57a   : > { %v1581_v55 = vadd.f32 %v2172_v54, %v1874_v45  ;;  %v1572_v57 = vpop.f32.mrb[53].mxu0 }
 0x57b   : > { %v1573_v56 = vadd.f32 %v1874_v45, %v1572_v57  ;;  %v2173_v58 = vpop.f32.mrb[54].mxu0 }
 0x57c   : > { %1625 = vst [vmem:[%s3217_s13 + $0x30] sm:$0xff] %v1581_v55  ;;  %v1584_v59 = vadd.f32 %v2173_v58, %v1874_v45  ;;  %v1575_v60 = vpop.f32.mrb[55].mxu0 }
 0x57d   : > { %1623 = vst [vmem:[%s3217_s13 + $0x20] sm:$0xff] %v1573_v56  ;;  %v1576_v61 = vadd.f32 %v1874_v45, %v1575_v60 }
 0x57e   : > { %1626 = vst [vmem:[%s3217_s13 + $0x38] sm:$0xff] %v1584_v59 }
 0x57f   : > { %1624 = vst [vmem:[%s3217_s13 + $0x28] sm:$0xff] %v1576_v61 }
 0x581   : > { %v2176_v62 = vpop.f32.mrb[32].mxu1 }
 0x582   : > { %v1597_v63 = vadd.f32 %v2176_v62, %v1874_v45  ;;  %v1588_v0 = vpop.f32.mrb[33].mxu1 }
 0x583   : > { %v1589_v1 = vadd.f32 %v1874_v45, %v1588_v0  ;;  %v2177_v2 = vpop.f32.mrb[34].mxu1 }
 0x584   : > { %1629 = vst [vmem:[%s3217_s13 + $0x50] sm:$0xff] %v1597_v63  ;;  %v1600_v3 = vadd.f32 %v2177_v2, %v1874_v45  ;;  %v1591_v4 = vpop.f32.mrb[35].mxu1 }
 0x585   : > { %1627 = vst [vmem:[%s3217_s13 + $0x40] sm:$0xff] %v1589_v1  ;;  %v1592_v6 = vadd.f32 %v1874_v45, %v1591_v4 }
 0x586   : > { %1630 = vst [vmem:[%s3217_s13 + $0x58] sm:$0xff] %v1600_v3 }
 0x587   : > { %1628 = vst [vmem:[%s3217_s13 + $0x48] sm:$0xff] %v1592_v6 }
 0x589   : > { %v2180_v5 = vpop.f32.mrb[36].mxu1 }
 0x58a   : > { %v1613_v7 = vadd.f32 %v2180_v5, %v1874_v45  ;;  %v1604_v8 = vpop.f32.mrb[37].mxu1 }
 0x58b   : > { %v1605_v9 = vadd.f32 %v1874_v45, %v1604_v8  ;;  %v2181_v10 = vpop.f32.mrb[38].mxu1 }
 0x58c   : > { %1633 = vst [vmem:[%s3217_s13 + $0x70] sm:$0xff] %v1613_v7  ;;  %v1616_v11 = vadd.f32 %v2181_v10, %v1874_v45  ;;  %v1607_v12 = vpop.f32.mrb[39].mxu1 }
 0x58d   : > { %1631 = vst [vmem:[%s3217_s13 + $0x60] sm:$0xff] %v1605_v9  ;;  %v1608_v13 = vadd.f32 %v1874_v45, %v1607_v12 }
 0x58e   : > { %1634 = vst [vmem:[%s3217_s13 + $0x78] sm:$0xff] %v1616_v11 }
 0x58f   : > { %1632 = vst [vmem:[%s3217_s13 + $0x68] sm:$0xff] %v1608_v13 }
 0x590   : > { %2529 = shalt.err (!%p2526_p13)
}
 0x591   : > { %s2530_s20 = scalar_lea.hbm %s3239_s14, 2048  ;;  %s2534_s13 = scalar_lea.hbm %s3300_s5, 4096 }
 0x592   : > { %p2531_p6 = scmp.ne.s32.totalorder %s3239_s14, %s2530_s20  ;;  %p2535_p8 = scmp.lt.u32.totalorder %s3239_s14, %s3300_s5 }
 0x593   : > { %p2536_p1 = scmp.lt.u32.totalorder %s2534_s13, %s2530_s20  ;;  %p2538_p3 = scmp.lt.u32.totalorder %s2530_s20, %s3239_s14 }
 0x594   : > { %p2532_p7 = pnand %p2531_p6, %p3320_p12 }
 0x595   : > { %p2537_p10 = por %p2536_p1, %p2535_p8 }
 0x596   : > { %p2533_p2 = pneg %p2532_p7 }
 0x597   : > { %p2539_p5 = por %p2538_p3, %p2537_p10 }
 0x599   : > { %p2540_p9 = pnand %p2539_p5, %p2533_p2 }
 0x59b   : > { %2543 = shalt.err (!%p2540_p9)
}
 0x59c   : > { %2208 = dma.vmem_to_hbm [thread:$0]  (%p3320_p12), %s3241_s15, 2048, %s3239_s14, %s1636_s16, %s2614_s29, %s2614_s29, %s2615_s9  }
 0x59d PF: > { %s3321_s11 = sld [smem:[#allocation17_spill]]  ;;  %s1689_s18 = sand.u32 1, %s2586_s21  }
 0x59e   : > { %p3323_p0 = scmp.ge.s32.totalorder %s2606_s26, 2  ;;  %s1690_s24 = scalar_lea.sflag [#allocation6], %s1689_s18 }
 0x5a3   : > { %p3322_p11 = scmp.ne.s32.totalorder %s3321_s11, 0 }
 0x5a5   : > { %p2224_p4 = pnand %p3323_p0, %p3322_p11 }
 0x5a7   : > { %2577 = dma.done.wait (!%p2224_p4), %s1690_s24, 2048  }
 0x5a8   : > { %2579 = vsyncadd (!%p2224_p4), %s1690_s24, 4294965248  ;;  %s1699_s17 = scalar_lea.sflag [#allocation12], %s1689_s18 }
 0x5a9   : > { %2581 = dma.done.wait (!%p2224_p4), %s1699_s17, 2048  }
 0x5aa   : > { %2583 = vsyncadd (!%p2224_p4), %s1699_s17, 4294965248  ;;  %s27_s26 = sadd.s32 1, %s2606_s26   ;;  %s3324_s21 = smov %s2590_s22 }
 0x5ab   : > { %p24_p13 = scmp.ge.s32.totalorder %s27_s26, 4   ;;  %s3325_s22 = smov %s2594_s23 }
 0x5ac   : > { %s3326_s23 = smov %s2800_s27  ;;  %s3327_s24 = smov %s2602_s25 }
 0x5ad   : > { %s3328_s25 = smov %s3330_s12  ;;  %26 = sbr.rel (!%p24_p13) target bundleno = 9 (0x9), region = 119 }
 0x5b4   :  { %1704 = vsyncpa [#allocation5], 1 }
 0x5b5   :  { %1706 = vsyncpa [#allocation5 + $0x1], 1 }
 0x5b6   :  { %1707 = vsyncpa [#allocation8], 1 }
 0x5b7   :  { %1708 = vsyncpa [#allocation6], 1 }
 0x5b8   :  { %1710 = vsyncpa [#allocation6 + $0x1], 1 }
 0x5b9   :  { %1711 = vsyncpa [#allocation12], 1 }
 0x5ba   :  { %1713 = vsyncpa [#allocation12 + $0x1], 1 }

</bundles_post_ra>
